<compile_context>
chip_gen: v7x
topology: tpu7x:2x2x1
jax: 0.10.0
libtpu: 0.0.40
codegen_flags: <defaults>
</compile_context>

<pallas_src>
import functools

import jax
import jax.numpy as jnp
from jax import lax
from jax.experimental import pallas as pl
from jax.experimental.pallas import tpu as pltpu

EPS = 1e-5
LANE = 128


def _round_up(x, m):
    return (x + m - 1) // m * m


# ----------------------------------------------------------------------------
# Fused kernel
# ----------------------------------------------------------------------------
def _make_fused_kernel(s, Ho, Wo, Cin, Cmid, Cout_p, has_sc, out_dtype):
    M = Ho * Wo
    f32 = jnp.float32
    bf16 = jnp.bfloat16

    def kernel(*refs):
        it = iter(refs)
        x_ref = next(it)                        # (1, Ho, s, Wo, s*Cin) bf16  phase-grouped x
        s1_ref = next(it)                       # (1, s*Cin) f32              bn1 scale
        b1_ref = next(it)                       # (1, s*Cin) f32              bn1 bias
        w1_ref = next(it)                       # (9*Cin, Cmid) bf16          conv1 (bn2 scale folded)
        b2_ref = next(it)                       # (1, Cmid) f32               bn2 bias
        w2_ref = next(it)                       # (9*Cmid, Cout_p) bf16       conv2 (Cout zero-padded)
        wsc_ref = next(it) if has_sc else None  # (Cin, Cout_p) bf16          1x1 projection shortcut
        out_ref = next(it)                      # (1, M, Cout_p)
        apad_ref = next(it)                     # (Ho+2, s, Wo+2, s*Cin) bf16 halo scratch
        a2pad_ref = next(it)                    # (Ho+2, Wo+2, Cmid) bf16     halo scratch

        # ---- bn1 + relu in f32 (VPU work, hides under the MXU) ----
        xv = x_ref[0].astype(f32)
        a = jnp.maximum(xv * s1_ref[0] + b1_ref[0], 0.0)          # (Ho, s, Wo, s*Cin)

        # ---- halo-padded activation in bf16; every store is full sublane width ----
        zrow1 = jnp.zeros((1, s, Wo + 2, s * Cin), bf16)
        zcol1 = jnp.zeros((Ho, s, 1, s * Cin), f32)
        apad_ref[0:1] = zrow1
        apad_ref[Ho + 1:Ho + 2] = zrow1
        apad_ref[1:1 + Ho] = jnp.concatenate([zcol1, a, zcol1], axis=2).astype(bf16)

        # ---- conv1 as ONE matmul: 9 taps merged into the contraction dim (K = 9*Cin) ----
        taps1 = []
        for dy in range(3):
            rshift, rphase = divmod(dy - 1, s)
            r0 = 1 + rshift
            if s == 1:
                taps1.append(apad_ref[r0:r0 + Ho, 0, 0:Wo, :])           # dx = 0
                taps1.append(apad_ref[r0:r0 + Ho, 0, 1:1 + Wo, :])       # dx = 1
                taps1.append(apad_ref[r0:r0 + Ho, 0, 2:2 + Wo, :])       # dx = 2
            else:
                # phase-grouped layout: dx=0 lives in the previous column block (phase s-1),
                # dx=1..s are the channel phases of the current column block.
                taps1.append(apad_ref[r0:r0 + Ho, rphase, 0:Wo, (s - 1) * Cin:])  # dx = 0
                taps1.append(apad_ref[r0:r0 + Ho, rphase, 1:1 + Wo, :])           # dx = 1, 2
        slab1 = jnp.concatenate(taps1, axis=-1).reshape(M, 9 * Cin)     # bf16
        h = jnp.dot(slab1, w1_ref[...], preferred_element_type=f32) + b2_ref[0]

        # ---- relu(bn2(conv1)) into the second halo scratch (bf16 MXU operand) ----
        a2 = jnp.maximum(h, 0.0).reshape(Ho, Wo, Cmid)
        zrow2 = jnp.zeros((1, Wo + 2, Cmid), bf16)
        zcol2 = jnp.zeros((Ho, 1, Cmid), f32)
        a2pad_ref[0:1] = zrow2
        a2pad_ref[Ho + 1:Ho + 2] = zrow2
        a2pad_ref[1:1 + Ho] = jnp.concatenate([zcol2, a2, zcol2], axis=1).astype(bf16)

        # ---- shortcut from the ORIGINAL x tile (spec applies shortcut to raw x) ----
        if has_sc:
            x00 = x_ref[0, :, 0, :, 0:Cin].reshape(M, Cin)               # == x[::s, ::s, :]
            sc = jnp.dot(x00, wsc_ref[...], preferred_element_type=f32)  # (M, Cout_p)
        else:
            sc = x_ref[0, :, 0, :, :].reshape(M, Cin).astype(f32)        # identity (s=1, Cin==Cout)
            if Cout_p > Cin:
                sc = jnp.concatenate([sc, jnp.zeros((M, Cout_p - Cin), f32)], axis=-1)

        # ---- conv2 as ONE matmul (K = 9*Cmid); shortcut fused into the final add ----
        taps2 = [a2pad_ref[dy:dy + Ho, dx:dx + Wo, :]
                 for dy in range(3) for dx in range(3)]
        slab2 = jnp.concatenate(taps2, axis=-1).reshape(M, 9 * Cmid)     # bf16
        out_ref[0] = (sc + jnp.dot(slab2, w2_ref[...],
                                   preferred_element_type=f32)).astype(out_dtype)

    return kernel


# ----------------------------------------------------------------------------
# NHWC entry point (the one a real NHWC network should call directly)
# ----------------------------------------------------------------------------
def preact_block_forward_nhwc(x_nhwc, params, stride):
    s = int(stride)
    assert s in (1, 2), "only stride 1 / 2 supported (ResNet blocks)"
    N, H, W, Cin = x_nhwc.shape
    assert H % s == 0 and W % s == 0
    Ho, Wo = H // s, W // s
    assert Wo % 8 == 0, "W/stride must be a multiple of 8 (sublane tile)"
    M = Ho * Wo

    w1 = params['w1']                      # (3,3,Cin,Cmid)  HWIO
    w2 = params['w2']                      # (3,3,Cmid,Cout) HWIO
    Cmid, Cout = w1.shape[-1], w2.shape[-1]
    has_sc = 'wsc' in params
    if not has_sc:
        assert s == 1 and Cin == Cout, "identity shortcut needs stride=1 and Cin==Cout"
    Cout_p = _round_up(Cout, LANE)         # lane-dense output stores / HBM DMA

    f32, bf16 = jnp.float32, jnp.bfloat16

    # fold inference-mode BatchNorm into per-channel scale/bias (tiny, done in XLA)
    scale1 = params['bn1_gamma'] * lax.rsqrt(params['bn1_var'] + EPS)
    bias1 = params['bn1_beta'] - params['bn1_mean'] * scale1
    scale2 = params['bn2_gamma'] * lax.rsqrt(params['bn2_var'] + EPS)
    bias2 = params['bn2_beta'] - params['bn2_mean'] * scale2

    # phase-grouped channel layout: channel index p*Cin + c  <->  (col phase p, channel c)
    s1g = jnp.tile(scale1, s).reshape(1, s * Cin).astype(f32)
    b1g = jnp.tile(bias1, s).reshape(1, s * Cin).astype(f32)

    # conv1 weights with bn2 scale folded, rows ordered (dy, dx, cin); bf16 for the MXU
    w1s = (w1.astype(f32) * scale2.astype(f32)).reshape(9 * Cin, Cmid).astype(bf16)
    # conv2 weights, rows ordered (dy, dx, cmid), output channels zero-padded to Cout_p
    w2s = jnp.pad(w2.astype(f32), ((0, 0), (0, 0), (0, 0), (0, Cout_p - Cout))
                  ).reshape(9 * Cmid, Cout_p).astype(bf16)

    # FREE row-major reshape: x[n, s*i+rp, s*j+p, c] -> xg[n, i, rp, j, p*Cin+c]; bf16 in HBM
    xg = x_nhwc.astype(bf16).reshape(N, Ho, s, Wo, s * Cin)

    args = [xg, s1g, b1g, w1s, bias2.reshape(1, Cmid).astype(f32), w2s]
    in_specs = [
        pl.BlockSpec((1, Ho, s, Wo, s * Cin), lambda n: (n, 0, 0, 0, 0)),
        pl.BlockSpec((1, s * Cin), lambda n: (0, 0)),
        pl.BlockSpec((1, s * Cin), lambda n: (0, 0)),
        pl.BlockSpec((9 * Cin, Cmid), lambda n: (0, 0)),
        pl.BlockSpec((1, Cmid), lambda n: (0, 0)),
        pl.BlockSpec((9 * Cmid, Cout_p), lambda n: (0, 0)),
    ]
    if has_sc:
        wsc = jnp.pad(params['wsc'].reshape(Cin, Cout).astype(f32),
                      ((0, 0), (0, Cout_p - Cout))).astype(bf16)
        args.append(wsc)
        in_specs.append(pl.BlockSpec((Cin, Cout_p), lambda n: (0, 0)))

    # explicit VMEM budget: 2x(x block) + 2x(out block) + weights + halo scratches + slabs
    est = (2 * Ho * s * Wo * s * Cin * 2                                  # xg block (bf16)
           + 2 * M * Cout_p * 4                                           # out block (f32)
           + 2 * (9 * Cin * Cmid + 9 * Cmid * Cout_p + Cin * Cout_p) * 2  # weights (bf16)
           + (Ho + 2) * s * (Wo + 2) * s * Cin * 2                        # apad scratch
           + (Ho + 2) * (Wo + 2) * Cmid * 2                               # a2pad scratch
           + M * (9 * Cin + 9 * Cmid) * 2                                 # tap slabs (bf16)
           + 3 * M * max(Cmid, Cout_p) * 4)                               # f32 temporaries
    vmem_limit = int(min(max(2 * est, 16 * 2 ** 20), 96 * 2 ** 20))

    kernel = _make_fused_kernel(s, Ho, Wo, Cin, Cmid, Cout_p, has_sc, f32)
    out3 = pl.pallas_call(
        kernel,
        out_shape=jax.ShapeDtypeStruct((N, M, Cout_p), f32),
        grid=(N,),
        in_specs=in_specs,
        out_specs=pl.BlockSpec((1, M, Cout_p), lambda n: (n, 0, 0)),
        scratch_shapes=[pltpu.VMEM((Ho + 2, s, Wo + 2, s * Cin), bf16),
                        pltpu.VMEM((Ho + 2, Wo + 2, Cmid), bf16)],
        compiler_params=pltpu.CompilerParams(
            dimension_semantics=("parallel",),
            vmem_limit_bytes=vmem_limit),
    )(*args)

    # drop the output-channel padding (fuses with whatever consumes the result)
    return out3[:, :, :Cout].reshape(N, Ho, Wo, Cout)


# ----------------------------------------------------------------------------
# NCHW wrapper matching the PyTorch module interface
# ----------------------------------------------------------------------------
def preact_block_forward(x_nchw, params, stride):
    x = jnp.transpose(x_nchw, (0, 2, 3, 1))                # NCHW -> NHWC (harness glue)
    out = preact_block_forward_nhwc(x, params, stride)
    return jnp.transpose(out, (0, 3, 1, 2))                # NHWC -> NCHW


# ----------------------------------------------------------------------------
# Deterministic parameters + pure-JAX f32 reference
# ----------------------------------------------------------------------------
def init_params(key, in_planes, planes, stride):
    ks = jax.random.split(key, 11)
    p = {
        'bn1_gamma': jax.random.uniform(ks[0], (in_planes,), jnp.float32, 0.5, 1.5),
        'bn1_beta': 0.1 * jax.random.normal(ks[1], (in_planes,), jnp.float32),
        'bn1_mean': 0.1 * jax.random.normal(ks[2], (in_planes,), jnp.float32),
        'bn1_var': jax.random.uniform(ks[3], (in_planes,), jnp.float32, 0.5, 1.5),
        'bn2_gamma': jax.random.uniform(ks[4], (planes,), jnp.float32, 0.5, 1.5),
        'bn2_beta': 0.1 * jax.random.normal(ks[5], (planes,), jnp.float32),
        'bn2_mean': 0.1 * jax.random.normal(ks[6], (planes,), jnp.float32),
        'bn2_var': jax.random.uniform(ks[7], (planes,), jnp.float32, 0.5, 1.5),
        'w1': 0.1 * jax.random.normal(ks[8], (3, 3, in_planes, planes), jnp.float32),
        'w2': 0.1 * jax.random.normal(ks[9], (3, 3, planes, planes), jnp.float32),
    }
    if (stride != 1) or (in_planes != planes):
        p['wsc'] = 0.1 * jax.random.normal(ks[10], (1, 1, in_planes, planes), jnp.float32)
    return p


def ref_forward(x_nchw, p, stride):
    dn = ('NHWC', 'HWIO', 'NHWC')
    x = jnp.transpose(x_nchw, (0, 2, 3, 1)).astype(jnp.float32)

    def bn(v, pre):
        return ((v - p[pre + '_mean']) / jnp.sqrt(p[pre + '_var'] + EPS)
                * p[pre + '_gamma'] + p[pre + '_beta'])

    out = jax.nn.relu(bn(x, 'bn1'))
    if 'wsc' in p:
        shortcut = lax.conv_general_dilated(x, p['wsc'], (stride, stride), 'VALID',
                                            dimension_numbers=dn)
    else:
        shortcut = x
    out = lax.conv_general_dilated(out, p['w1'], (stride, stride),
                                   ((1, 1), (1, 1)), dimension_numbers=dn)
    out = jax.nn.relu(bn(out, 'bn2'))
    out = lax.conv_general_dilated(out, p['w2'], (1, 1),
                                   ((1, 1), (1, 1)), dimension_numbers=dn)
    out = out + shortcut
    return jnp.transpose(out, (0, 3, 1, 2))


if __name__ == "__main__":
    key = jax.random.PRNGKey(0)
    configs = [
        # (N, in_planes, H, W, planes, stride)
        (2, 4, 16, 16, 8, 2),   # strided block with 1x1-conv shortcut
        (2, 8, 16, 16, 8, 1),   # stride-1 block with identity shortcut
    ]
    for (N, cin, H, W, planes, stride) in configs:
        kx, kp, key = jax.random.split(key, 3)
        x = jax.random.normal(kx, (N, cin, H, W), jnp.float32)   # NCHW like PyTorch
        params = init_params(kp, cin, planes, stride)

        fwd = jax.jit(functools.partial(preact_block_forward, stride=stride))
        out = jax.block_until_ready(fwd(x, params))
        assert out.shape == (N, planes, H // stride, W // stride), out.shape

        ref = ref_forward(x, params, stride)
        diff = out - ref
        rel = float(jnp.linalg.norm(diff) / (jnp.linalg.norm(ref) + 1e-12))
        mx = float(jnp.max(jnp.abs(diff)))
        # bf16 MXU operands with f32 accumulation vs the pure-f32 reference
        if not (rel < 2.5e-2 and mx < 0.2):
            raise AssertionError(
                f"Pallas/XLA mismatch (stride={stride}): rel_l2={rel:.4e}, max_abs={mx:.4e}")

    print("KERNEL_OK")
</pallas_src>

<mosaic_0001>
module attributes {stable_mosaic.version = 11 : i64} {
  func.func @kernel(%arg0: i32, %arg1: memref<1x8x2x8x8xbf16, #tpu.memory_space<vmem>>, %arg2: memref<1x8xf32, #tpu.memory_space<vmem>>, %arg3: memref<1x8xf32, #tpu.memory_space<vmem>>, %arg4: memref<36x8xbf16, #tpu.memory_space<vmem>>, %arg5: memref<1x8xf32, #tpu.memory_space<vmem>>, %arg6: memref<72x128xbf16, #tpu.memory_space<vmem>>, %arg7: memref<4x128xbf16, #tpu.memory_space<vmem>>, %arg8: memref<1x64x128xf32, #tpu.memory_space<vmem>>, %arg9: memref<10x2x10x8xbf16, #tpu.memory_space<vmem>>, %arg10: memref<10x10x8xbf16, #tpu.memory_space<vmem>>) attributes {dimension_semantics = [#tpu.dimension_semantics<parallel>], iteration_bounds = array<i64: 2>, scalar_prefetch = 0 : i64, scratch_operands = 2 : i64, tpu.core_type = #tpu.core_type<tc>, window_params = [{transform_indices = @transform_0, window_bounds = array<i64: 1, 8, 2, 8, 8>}, {pipeline_mode = #tpu.pipeline_mode<synchronous>, transform_indices = @transform_1, window_bounds = array<i64: 1, 8>}, {pipeline_mode = #tpu.pipeline_mode<synchronous>, transform_indices = @transform_2, window_bounds = array<i64: 1, 8>}, {pipeline_mode = #tpu.pipeline_mode<synchronous>, transform_indices = @transform_3, window_bounds = array<i64: 36, 8>}, {pipeline_mode = #tpu.pipeline_mode<synchronous>, transform_indices = @transform_4, window_bounds = array<i64: 1, 8>}, {pipeline_mode = #tpu.pipeline_mode<synchronous>, transform_indices = @transform_5, window_bounds = array<i64: 72, 128>}, {pipeline_mode = #tpu.pipeline_mode<synchronous>, transform_indices = @transform_6, window_bounds = array<i64: 4, 128>}, {transform_indices = @transform_7, window_bounds = array<i64: 1, 64, 128>}]} {
    %c0 = arith.constant 0 : index
    %c0_0 = arith.constant 0 : index
    %c0_1 = arith.constant 0 : index
    %c0_2 = arith.constant 0 : index
    %c0_3 = arith.constant 0 : index
    %0 = vector.load %arg1[%c0, %c0_0, %c0_1, %c0_2, %c0_3] : memref<1x8x2x8x8xbf16, #tpu.memory_space<vmem>>, vector<1x8x2x8x8xbf16>
    %1 = vector.shape_cast %0 : vector<1x8x2x8x8xbf16> to vector<8x2x8x8xbf16>
    %2 = arith.extf %1 : vector<8x2x8x8xbf16> to vector<8x2x8x8xf32>
    %c0_4 = arith.constant 0 : index
    %c0_5 = arith.constant 0 : index
    %3 = vector.load %arg2[%c0_4, %c0_5] : memref<1x8xf32, #tpu.memory_space<vmem>>, vector<1x8xf32>
    %4 = vector.shape_cast %3 : vector<1x8xf32> to vector<8xf32>
    %5 = vector.shape_cast %4 : vector<8xf32> to vector<1x1x1x8xf32>
    %6 = vector.broadcast %5 : vector<1x1x1x8xf32> to vector<8x2x8x8xf32>
    %7 = arith.mulf %2, %6 : vector<8x2x8x8xf32>
    %c0_6 = arith.constant 0 : index
    %c0_7 = arith.constant 0 : index
    %8 = vector.load %arg3[%c0_6, %c0_7] : memref<1x8xf32, #tpu.memory_space<vmem>>, vector<1x8xf32>
    %9 = vector.shape_cast %8 : vector<1x8xf32> to vector<8xf32>
    %10 = vector.shape_cast %9 : vector<8xf32> to vector<1x1x1x8xf32>
    %11 = vector.broadcast %10 : vector<1x1x1x8xf32> to vector<8x2x8x8xf32>
    %12 = arith.addf %7, %11 : vector<8x2x8x8xf32>
    %cst = arith.constant 0.000000e+00 : f32
    %13 = vector.broadcast %cst : f32 to vector<8x2x8x8xf32>
    %14 = arith.maximumf %12, %13 : vector<8x2x8x8xf32>
    %cst_8 = arith.constant 0.000000e+00 : bf16
    %15 = vector.broadcast %cst_8 : bf16 to vector<1x2x10x8xbf16>
    %cst_9 = arith.constant 0.000000e+00 : f32
    %16 = vector.broadcast %cst_9 : f32 to vector<8x2x1x8xf32>
    %c0_10 = arith.constant 0 : index
    %c0_11 = arith.constant 0 : index
    %c0_12 = arith.constant 0 : index
    %c0_13 = arith.constant 0 : index
    %17 = vector.load %arg9[%c0_10, %c0_11, %c0_12, %c0_13] : memref<10x2x10x8xbf16, #tpu.memory_space<vmem>>, vector<1x2x10x8xbf16>
    tpu.vector_store %arg9[%c0_10, %c0_11, %c0_12, %c0_13], %15 {strides = array<i32>} : memref<10x2x10x8xbf16, #tpu.memory_space<vmem>>, vector<1x2x10x8xbf16>,
    %c9 = arith.constant 9 : index
    %c0_14 = arith.constant 0 : index
    %c0_15 = arith.constant 0 : index
    %c0_16 = arith.constant 0 : index
    %18 = vector.load %arg9[%c9, %c0_14, %c0_15, %c0_16] : memref<10x2x10x8xbf16, #tpu.memory_space<vmem>>, vector<1x2x10x8xbf16>
    tpu.vector_store %arg9[%c9, %c0_14, %c0_15, %c0_16], %15 {strides = array<i32>} : memref<10x2x10x8xbf16, #tpu.memory_space<vmem>>, vector<1x2x10x8xbf16>,
    %19 = tpu.concatenate %16, %14, %16 in 2 : vector<8x2x1x8xf32>, vector<8x2x8x8xf32>, vector<8x2x1x8xf32> -> vector<8x2x10x8xf32>
    %20 = arith.truncf %19 : vector<8x2x10x8xf32> to vector<8x2x10x8xbf16>
    %c1 = arith.constant 1 : index
    %c0_17 = arith.constant 0 : index
    %c0_18 = arith.constant 0 : index
    %c0_19 = arith.constant 0 : index
    %21 = vector.load %arg9[%c1, %c0_17, %c0_18, %c0_19] : memref<10x2x10x8xbf16, #tpu.memory_space<vmem>>, vector<8x2x10x8xbf16>
    tpu.vector_store %arg9[%c1, %c0_17, %c0_18, %c0_19], %20 {strides = array<i32>} : memref<10x2x10x8xbf16, #tpu.memory_space<vmem>>, vector<8x2x10x8xbf16>,
    %c0_20 = arith.constant 0 : index
    %c1_21 = arith.constant 1 : index
    %c0_22 = arith.constant 0 : index
    %c4 = arith.constant 4 : index
    %22 = vector.load %arg9[%c0_20, %c1_21, %c0_22, %c4] : memref<10x2x10x8xbf16, #tpu.memory_space<vmem>>, vector<8x1x8x4xbf16>
    %23 = vector.shape_cast %22 : vector<8x1x8x4xbf16> to vector<8x8x4xbf16>
    %c0_23 = arith.constant 0 : index
    %c1_24 = arith.constant 1 : index
    %c1_25 = arith.constant 1 : index
    %c0_26 = arith.constant 0 : index
    %24 = vector.load %arg9[%c0_23, %c1_24, %c1_25, %c0_26] : memref<10x2x10x8xbf16, #tpu.memory_space<vmem>>, vector<8x1x8x8xbf16>
    %25 = vector.shape_cast %24 : vector<8x1x8x8xbf16> to vector<8x8x8xbf16>
    %c1_27 = arith.constant 1 : index
    %c0_28 = arith.constant 0 : index
    %c0_29 = arith.constant 0 : index
    %c4_30 = arith.constant 4 : index
    %26 = vector.load %arg9[%c1_27, %c0_28, %c0_29, %c4_30] : memref<10x2x10x8xbf16, #tpu.memory_space<vmem>>, vector<8x1x8x4xbf16>
    %27 = vector.shape_cast %26 : vector<8x1x8x4xbf16> to vector<8x8x4xbf16>
    %c1_31 = arith.constant 1 : index
    %c0_32 = arith.constant 0 : index
    %c1_33 = arith.constant 1 : index
    %c0_34 = arith.constant 0 : index
    %28 = vector.load %arg9[%c1_31, %c0_32, %c1_33, %c0_34] : memref<10x2x10x8xbf16, #tpu.memory_space<vmem>>, vector<8x1x8x8xbf16>
    %29 = vector.shape_cast %28 : vector<8x1x8x8xbf16> to vector<8x8x8xbf16>
    %c1_35 = arith.constant 1 : index
    %c1_36 = arith.constant 1 : index
    %c0_37 = arith.constant 0 : index
    %c4_38 = arith.constant 4 : index
    %30 = vector.load %arg9[%c1_35, %c1_36, %c0_37, %c4_38] : memref<10x2x10x8xbf16, #tpu.memory_space<vmem>>, vector<8x1x8x4xbf16>
    %31 = vector.shape_cast %30 : vector<8x1x8x4xbf16> to vector<8x8x4xbf16>
    %c1_39 = arith.constant 1 : index
    %c1_40 = arith.constant 1 : index
    %c1_41 = arith.constant 1 : index
    %c0_42 = arith.constant 0 : index
    %32 = vector.load %arg9[%c1_39, %c1_40, %c1_41, %c0_42] : memref<10x2x10x8xbf16, #tpu.memory_space<vmem>>, vector<8x1x8x8xbf16>
    %33 = vector.shape_cast %32 : vector<8x1x8x8xbf16> to vector<8x8x8xbf16>
    %34 = tpu.concatenate %23, %25, %27, %29, %31, %33 in 2 : vector<8x8x4xbf16>, vector<8x8x8xbf16>, vector<8x8x4xbf16>, vector<8x8x8xbf16>, vector<8x8x4xbf16>, vector<8x8x8xbf16> -> vector<8x8x36xbf16>
    %35 = vector.shape_cast %34 : vector<8x8x36xbf16> to vector<64x36xbf16>
    %c0_43 = arith.constant 0 : index
    %c0_44 = arith.constant 0 : index
    %36 = vector.load %arg4[%c0_43, %c0_44] : memref<36x8xbf16, #tpu.memory_space<vmem>>, vector<36x8xbf16>
    %cst_45 = arith.constant dense<0.000000e+00> : vector<64x8xf32>
    %37 = tpu.matmul %35, %36, %cst_45 {dimension_numbers = #tpu.dot_dimension_numbers<[1], [0], [0], [1], [0, 0, 1, 1], [], []>} : vector<64x36xbf16>, vector<36x8xbf16>, vector<64x8xf32> -> vector<64x8xf32>
    %c0_46 = arith.constant 0 : index
    %c0_47 = arith.constant 0 : index
    %38 = vector.load %arg5[%c0_46, %c0_47] : memref<1x8xf32, #tpu.memory_space<vmem>>, vector<1x8xf32>
    %39 = vector.shape_cast %38 : vector<1x8xf32> to vector<8xf32>
    %40 = vector.shape_cast %39 : vector<8xf32> to vector<1x8xf32>
    %41 = vector.broadcast %40 : vector<1x8xf32> to vector<64x8xf32>
    %42 = arith.addf %37, %41 : vector<64x8xf32>
    %cst_48 = arith.constant 0.000000e+00 : f32
    %43 = vector.broadcast %cst_48 : f32 to vector<64x8xf32>
    %44 = arith.maximumf %42, %43 : vector<64x8xf32>
    %45 = vector.shape_cast %44 : vector<64x8xf32> to vector<8x8x8xf32>
    %cst_49 = arith.constant 0.000000e+00 : bf16
    %46 = vector.broadcast %cst_49 : bf16 to vector<1x10x8xbf16>
    %cst_50 = arith.constant 0.000000e+00 : f32
    %47 = vector.broadcast %cst_50 : f32 to vector<8x1x8xf32>
    %c0_51 = arith.constant 0 : index
    %c0_52 = arith.constant 0 : index
    %c0_53 = arith.constant 0 : index
    %48 = vector.load %arg10[%c0_51, %c0_52, %c0_53] : memref<10x10x8xbf16, #tpu.memory_space<vmem>>, vector<1x10x8xbf16>
    tpu.vector_store %arg10[%c0_51, %c0_52, %c0_53], %46 {strides = array<i32>} : memref<10x10x8xbf16, #tpu.memory_space<vmem>>, vector<1x10x8xbf16>,
    %c9_54 = arith.constant 9 : index
    %c0_55 = arith.constant 0 : index
    %c0_56 = arith.constant 0 : index
    %49 = vector.load %arg10[%c9_54, %c0_55, %c0_56] : memref<10x10x8xbf16, #tpu.memory_space<vmem>>, vector<1x10x8xbf16>
    tpu.vector_store %arg10[%c9_54, %c0_55, %c0_56], %46 {strides = array<i32>} : memref<10x10x8xbf16, #tpu.memory_space<vmem>>, vector<1x10x8xbf16>,
    %50 = tpu.concatenate %47, %45, %47 in 1 : vector<8x1x8xf32>, vector<8x8x8xf32>, vector<8x1x8xf32> -> vector<8x10x8xf32>
    %51 = arith.truncf %50 : vector<8x10x8xf32> to vector<8x10x8xbf16>
    %c1_57 = arith.constant 1 : index
    %c0_58 = arith.constant 0 : index
    %c0_59 = arith.constant 0 : index
    %52 = vector.load %arg10[%c1_57, %c0_58, %c0_59] : memref<10x10x8xbf16, #tpu.memory_space<vmem>>, vector<8x10x8xbf16>
    tpu.vector_store %arg10[%c1_57, %c0_58, %c0_59], %51 {strides = array<i32>} : memref<10x10x8xbf16, #tpu.memory_space<vmem>>, vector<8x10x8xbf16>,
    %c0_60 = arith.constant 0 : index
    %c0_61 = arith.constant 0 : index
    %c0_62 = arith.constant 0 : index
    %c0_63 = arith.constant 0 : index
    %c0_64 = arith.constant 0 : index
    %53 = vector.load %arg1[%c0_60, %c0_61, %c0_62, %c0_63, %c0_64] : memref<1x8x2x8x8xbf16, #tpu.memory_space<vmem>>, vector<1x8x1x8x4xbf16>
    %54 = vector.shape_cast %53 : vector<1x8x1x8x4xbf16> to vector<8x8x4xbf16>
    %55 = vector.shape_cast %54 : vector<8x8x4xbf16> to vector<64x4xbf16>
    %c0_65 = arith.constant 0 : index
    %c0_66 = arith.constant 0 : index
    %56 = vector.load %arg7[%c0_65, %c0_66] : memref<4x128xbf16, #tpu.memory_space<vmem>>, vector<4x128xbf16>
    %cst_67 = arith.constant dense<0.000000e+00> : vector<64x128xf32>
    %57 = tpu.matmul %55, %56, %cst_67 {dimension_numbers = #tpu.dot_dimension_numbers<[1], [0], [0], [1], [0, 0, 1, 1], [], []>} : vector<64x4xbf16>, vector<4x128xbf16>, vector<64x128xf32> -> vector<64x128xf32>
    %c0_68 = arith.constant 0 : index
    %c0_69 = arith.constant 0 : index
    %c0_70 = arith.constant 0 : index
    %58 = vector.load %arg10[%c0_68, %c0_69, %c0_70] : memref<10x10x8xbf16, #tpu.memory_space<vmem>>, vector<8x8x8xbf16>
    %c0_71 = arith.constant 0 : index
    %c1_72 = arith.constant 1 : index
    %c0_73 = arith.constant 0 : index
    %59 = vector.load %arg10[%c0_71, %c1_72, %c0_73] : memref<10x10x8xbf16, #tpu.memory_space<vmem>>, vector<8x8x8xbf16>
    %c0_74 = arith.constant 0 : index
    %c2 = arith.constant 2 : index
    %c0_75 = arith.constant 0 : index
    %60 = vector.load %arg10[%c0_74, %c2, %c0_75] : memref<10x10x8xbf16, #tpu.memory_space<vmem>>, vector<8x8x8xbf16>
    %c1_76 = arith.constant 1 : index
    %c0_77 = arith.constant 0 : index
    %c0_78 = arith.constant 0 : index
    %61 = vector.load %arg10[%c1_76, %c0_77, %c0_78] : memref<10x10x8xbf16, #tpu.memory_space<vmem>>, vector<8x8x8xbf16>
    %c1_79 = arith.constant 1 : index
    %c1_80 = arith.constant 1 : index
    %c0_81 = arith.constant 0 : index
    %62 = vector.load %arg10[%c1_79, %c1_80, %c0_81] : memref<10x10x8xbf16, #tpu.memory_space<vmem>>, vector<8x8x8xbf16>
    %c1_82 = arith.constant 1 : index
    %c2_83 = arith.constant 2 : index
    %c0_84 = arith.constant 0 : index
    %63 = vector.load %arg10[%c1_82, %c2_83, %c0_84] : memref<10x10x8xbf16, #tpu.memory_space<vmem>>, vector<8x8x8xbf16>
    %c2_85 = arith.constant 2 : index
    %c0_86 = arith.constant 0 : index
    %c0_87 = arith.constant 0 : index
    %64 = vector.load %arg10[%c2_85, %c0_86, %c0_87] : memref<10x10x8xbf16, #tpu.memory_space<vmem>>, vector<8x8x8xbf16>
    %c2_88 = arith.constant 2 : index
    %c1_89 = arith.constant 1 : index
    %c0_90 = arith.constant 0 : index
    %65 = vector.load %arg10[%c2_88, %c1_89, %c0_90] : memref<10x10x8xbf16, #tpu.memory_space<vmem>>, vector<8x8x8xbf16>
    %c2_91 = arith.constant 2 : index
    %c2_92 = arith.constant 2 : index
    %c0_93 = arith.constant 0 : index
    %66 = vector.load %arg10[%c2_91, %c2_92, %c0_93] : memref<10x10x8xbf16, #tpu.memory_space<vmem>>, vector<8x8x8xbf16>
    %67 = tpu.concatenate %58, %59, %60, %61, %62, %63, %64, %65, %66 in 2 : vector<8x8x8xbf16>, vector<8x8x8xbf16>, vector<8x8x8xbf16>, vector<8x8x8xbf16>, vector<8x8x8xbf16>, vector<8x8x8xbf16>, vector<8x8x8xbf16>, vector<8x8x8xbf16>, vector<8x8x8xbf16> -> vector<8x8x72xbf16>
    %68 = vector.shape_cast %67 : vector<8x8x72xbf16> to vector<64x72xbf16>
    %c0_94 = arith.constant 0 : index
    %c0_95 = arith.constant 0 : index
    %69 = vector.load %arg6[%c0_94, %c0_95] : memref<72x128xbf16, #tpu.memory_space<vmem>>, vector<72x128xbf16>
    %cst_96 = arith.constant dense<0.000000e+00> : vector<64x128xf32>
    %70 = tpu.matmul %68, %69, %cst_96 {dimension_numbers = #tpu.dot_dimension_numbers<[1], [0], [0], [1], [0, 0, 1, 1], [], []>} : vector<64x72xbf16>, vector<72x128xbf16>, vector<64x128xf32> -> vector<64x128xf32>
    %71 = arith.addf %57, %70 : vector<64x128xf32>
    %c0_97 = arith.constant 0 : index
    %c0_98 = arith.constant 0 : index
    %c0_99 = arith.constant 0 : index
    %72 = vector.load %arg8[%c0_97, %c0_98, %c0_99] : memref<1x64x128xf32, #tpu.memory_space<vmem>>, vector<1x64x128xf32>
    %73 = vector.shape_cast %72 : vector<1x64x128xf32> to vector<64x128xf32>
    %74 = vector.shape_cast %71 : vector<64x128xf32> to vector<1x64x128xf32>
    tpu.vector_store %arg8[%c0_97, %c0_98, %c0_99], %74 {strides = array<i32>} : memref<1x64x128xf32, #tpu.memory_space<vmem>>, vector<1x64x128xf32>,
    return
  }
  func.func @transform_0(%arg0: i32) -> (i32, i32, i32, i32, i32) {
    %c0_i32 = arith.constant 0 : i32
    %c0_i32_0 = arith.constant 0 : i32
    %c0_i32_1 = arith.constant 0 : i32
    %c0_i32_2 = arith.constant 0 : i32
    %c0_i32_3 = arith.constant 0 : i32
    return %arg0, %c0_i32, %c0_i32_0, %c0_i32_1, %c0_i32_2 : i32, i32, i32, i32, i32
  }
  func.func @transform_1(%arg0: i32) -> (i32, i32) {
    %c0_i32 = arith.constant 0 : i32
    %c0_i32_0 = arith.constant 0 : i32
    %c0_i32_1 = arith.constant 0 : i32
    return %c0_i32, %c0_i32_0 : i32, i32
  }
  func.func @transform_2(%arg0: i32) -> (i32, i32) {
    %c0_i32 = arith.constant 0 : i32
    %c0_i32_0 = arith.constant 0 : i32
    %c0_i32_1 = arith.constant 0 : i32
    return %c0_i32, %c0_i32_0 : i32, i32
  }
  func.func @transform_3(%arg0: i32) -> (i32, i32) {
    %c0_i32 = arith.constant 0 : i32
    %c0_i32_0 = arith.constant 0 : i32
    %c0_i32_1 = arith.constant 0 : i32
    return %c0_i32, %c0_i32_0 : i32, i32
  }
  func.func @transform_4(%arg0: i32) -> (i32, i32) {
    %c0_i32 = arith.constant 0 : i32
    %c0_i32_0 = arith.constant 0 : i32
    %c0_i32_1 = arith.constant 0 : i32
    return %c0_i32, %c0_i32_0 : i32, i32
  }
  func.func @transform_5(%arg0: i32) -> (i32, i32) {
    %c0_i32 = arith.constant 0 : i32
    %c0_i32_0 = arith.constant 0 : i32
    %c0_i32_1 = arith.constant 0 : i32
    return %c0_i32, %c0_i32_0 : i32, i32
  }
  func.func @transform_6(%arg0: i32) -> (i32, i32) {
    %c0_i32 = arith.constant 0 : i32
    %c0_i32_0 = arith.constant 0 : i32
    %c0_i32_1 = arith.constant 0 : i32
    return %c0_i32, %c0_i32_0 : i32, i32
  }
  func.func @transform_7(%arg0: i32) -> (i32, i32, i32) {
    %c0_i32 = arith.constant 0 : i32
    %c0_i32_0 = arith.constant 0 : i32
    %c0_i32_1 = arith.constant 0 : i32
    return %arg0, %c0_i32, %c0_i32_0 : i32, i32, i32
  }
}

</mosaic_0001>

<bundles_post_ra>
// kernel: tile.14
= control target key start
LH: loop header
LB: loop body
LE: loop exit
PB: predicated region body
PF: predicated region fallthrough
CT: control target
= control target key end

     0   :  { %vm7_vm0 = vcmask 31744   ;;  %vm13_vm1 = vcmask 64544   ;;  %s39_s0 = inlined_call_operand.vmem [shape: f32[2,4], index: 0, kind: input, shape index: {}]   ;;  %s40_s1 = inlined_call_operand.vmem [shape: f32[1,8], index: 1, kind: output, shape index: {}]  }
   0x1   :  { %v4_v0 = vld [vmem:[%s39_s0] sm:$0x3]  ;;  %s22_s0 = smov 4  }
   0x2   :  { %5 = vst [vmem:[#allocation1] sm:$0x3] %v4_v0 }
   0x9   :  { %v10_v1 = vld [vmem:[#allocation1 + $0x1] sm:$0x1]   ;;  %v6_v2 = vld [vmem:[#allocation1] sm:$0x1]  }
   0xa   :  { %11 = vrot.lane.b32.xlu0 %v10_v1, %s22_s0  ;;  %8 = vst.msk [vmem:[#allocation0] sm:$0x1] %vm7_vm0, %v6_v2  }
  0x7c   :  { %v12_v3 = vpop.permute.xlu0 %11  }
  0x7d   :  { %14 = vst.msk [vmem:[#allocation0] sm:$0x1] %vm13_vm1, %v12_v3  }
  0x84   :  { %v18_v4 = vld [vmem:[#allocation0] sm:$0x1] }
  0x85   :  { %20 = vst [vmem:[%s40_s1] sm:$0x1] %v18_v4 }

// kernel: tile.13
= control target key start
LH: loop header
LB: loop body
LE: loop exit
PB: predicated region body
PF: predicated region fallthrough
CT: control target
= control target key end

     0   :  { %s22_s0 = inlined_call_operand.vmem [shape: f32[4], index: 0, kind: input, shape index: {}]   ;;  %s23_s1 = inlined_call_operand.vmem [shape: f32[2,4], index: 1, kind: output, shape index: {}]  }
   0x1   :  { %v4_v0 = vld [vmem:[%s22_s0] ss:$0 sm:$0xff] }
   0x2   :  { %5 = vst [vmem:[%s23_s1] sm:$0x3] %v4_v0 }

// kernel: preact_block_forward.1
= control target key start
LH: loop header
LB: loop body
LE: loop exit
PB: predicated region body
PF: predicated region fallthrough
CT: control target
= control target key end

     0   :  { %s3077_s24 = smov 0   ;;  %s3773_s0 = inlined_call_operand.vmem [shape: bf16[2,8,2,8,8], index: 0, kind: input, shape index: {}]   ;;  %s3774_s1 = inlined_call_operand.vmem [shape: f32[1,8], index: 1, kind: input, shape index: {}]   ;;  %s3775_s2 = inlined_call_operand.vmem [shape: f32[1,8], index: 2, kind: input, shape index: {}]   ;;  %s3776_s3 = inlined_call_operand.vmem [shape: bf16[36,8], index: 3, kind: input, shape index: {}]   ;;  %s3777_s4 = inlined_call_operand.vmem [shape: f32[1,8], index: 4, kind: input, shape index: {}]   ;;  %s3778_s5 = inlined_call_operand.vmem [shape: bf16[72,128], index: 5, kind: input, shape index: {}]   ;;  %s3779_s6 = inlined_call_operand.vmem [shape: bf16[4,128], index: 6, kind: input, shape index: {}]   ;;  %s3780_s7 = inlined_call_operand.vmem [shape: f32[2,64,128], index: 7, kind: output, shape index: {}]  }
   0x1 LB: > { %s2494_s25 = sadd.s32 4294967295, %s3022_s24   ;;  %p2498_p0 = scmp.ge.s32.totalorder %s3022_s24, 1  ;;  %s3022_s24 = sphi %s3077_s24, %s17_s24  }
   0x2   : > { %p237_p1 = scmp.lt.s32.totalorder %s3022_s24, 3 }
   0x4   : > { %p238_p2 = pnand %p2498_p0, %p237_p1 }
   0x5   : > { %vm374_vm0 = vcmask (!%p238_p2), 60416   ;;  %vm376_vm1 = vcmask (!%p238_p2), 57344   ;;  %v3024_v0 = vmov (!%p238_p2), 0   ;;  %p269_p3 = scmp.lt.s32.totalorder (!%p238_p2), %s2494_s25, 1  ;;  %v3097_v1 = vld [vmem:[%s3774_s1] ss:$0 sm:$0xff] (!%p238_p2) }
   0x6   : > { %241 = sbr.rel (%p238_p2) target bundleno = 891 (0x37b), region = 48  ;;  %378 = vst.msk [vmem:[#allocation2 + $0x8] sm:$0xf] (!%p238_p2), %vm374_vm0, %v3024_v0  ;;  %1315 = vst.msk [vmem:[#allocation3] sm:$0xf] (!%p238_p2), %vm374_vm0, %v3024_v0  ;;  %vm433_vm2 = vcmask (!%p238_p2), 1040384  }
   0x7   : > { %379 = vst.msk [vmem:[#allocation2 + $0xc] sm:$0x1] (!%p238_p2), %vm376_vm1, %v3024_v0  ;;  %1316 = vst.msk [vmem:[#allocation3 + $0x4] sm:$0x1] (!%p238_p2), %vm376_vm1, %v3024_v0  ;;  %v3115_v14 = vld [vmem:[%s3775_s2] ss:$0 sm:$0xff] (!%p238_p2) }
   0x8   : > { %1318 = vst.msk [vmem:[#allocation3 + $0x48] sm:$0xf] (!%p238_p2), %vm374_vm0, %v3024_v0  ;;  %s3025_s11 = smov (!%p238_p2), 124   ;;  %s3026_s12 = smov (!%p238_p2), 4   ;;  %vm1238_vm3 = vcmask (!%p238_p2), 1041408   ;;  %vm1085_vm4 = vcmask (!%p238_p2), 31744  }
   0x9   : > { %1319 = vst.msk [vmem:[#allocation3 + $0x4c] sm:$0x1] (!%p238_p2), %vm376_vm1, %v3024_v0  ;;  %s3027_s13 = smov (!%p238_p2), 8   ;;  %s3028_s14 = smov (!%p238_p2), 20   ;;  %vm1110_vm5 = vcmask (!%p238_p2), 97280   ;;  %vm1127_vm6 = vcmask (!%p238_p2), 130048  }
   0xa   : > { %s3029_s19 = smov (!%p238_p2), 16   ;;  %s3030_s20 = smov (!%p238_p2), 28   ;;  %vm1144_vm7 = vcmask (!%p238_p2), 195584   ;;  %vm1161_vm8 = vcmask (!%p238_p2), 228352   ;;  %vm1225_vm9 = vcmask (!%p238_p2), 293888   ;;  %vm2262_vm10 = vcmask (!%p238_p2), 1043456  }
   0xb   : > { %s3031_s23 = smov (!%p238_p2), 48   ;;  %s3032_s27 = smov (!%p238_p2), 56   ;;  %vm2051_vm11 = vcmask (!%p238_p2), 64512   ;;  %vm2108_vm12 = vcmask (!%p238_p2), 261120   ;;  %vm2125_vm13 = vcmask (!%p238_p2), 326656   ;;  %vm2142_vm14 = vcmask (!%p238_p2), 392192  }
   0xc   : > { %s3033_s28 = smov (!%p238_p2), 64   ;;  %s3034_s9 = smov (!%p238_p2), 24   ;;  %vm2159_vm15 = vcmask (!%p238_p2), 457728  }
   0xd   : > { %s3782_s25 = smov (!%p269_p3, %s2494_s25), 1  ;;  %v628_v5 = vld [vmem:[#allocation2 + $0x8] sm:$0xf]  ;;  %s3035_s10 = smov 40  }
   0xe   : > { %s2700_s26 = sshll.u32 %s3782_s25, 6  ;;  %v636_v6 = vld [vmem:[#allocation2 + $0xc] sm:$0x1]  ;;  %v2537_v13 = vcombine.low %v628_v5, %v628_v5 }
   0xf   : > { %s3104_s8 = scalar_lea.vmem %s3773_s0, %s2700_s26  ;;  %v2545_v12 = vcombine.low %v628_v5, %v636_v6 }
  0x10   : > { %v2783_v2 = vld [vmem:[%s3104_s8 + $0x10] sm:$0xff]   ;;  %v2751_v3 = vld [vmem:[%s3104_s8] sm:$0xff]   ;;  %v2782_v4 = vld [vmem:[%s3104_s8 + $0x8] sm:$0xff]   ;;  %701 = vrot.lane.b32.xlu0 %v2537_v13, %s3025_s11 }
  0x11   : > { %v2761_v7 = vunpack.c.h.bf16 %v2783_v2  ;;  %v2753_v8 = vunpack.c.h.bf16 %v2751_v3  ;;  %v2756_v9 = vunpack.c.l.bf16 %v2782_v4  ;;  %v2757_v10 = vunpack.c.h.bf16 %v2782_v4  ;;  %v3110_v11 = vld [vmem:[%s3104_s8 + $0x18] sm:$0xff]  }
  0x12   : > { %v2764_v15 = vunpack.c.l.bf16 %v3110_v11  ;;  %v2752_v16 = vunpack.c.l.bf16 %v2751_v3  ;;  %v742_v21 = vshrl.u32 %v2545_v12, 16  ;;  %v744_v22 = vshll.u32 %v2545_v12, 16  ;;  %v3161_v12 = vld [vmem:[%s3104_s8 + $0x30] sm:$0xff]  }
  0x13   : > { %v324_v17 = vmul.f32 %v2761_v7, %v3097_v1  ;;  %v320_v18 = vmul.f32 %v2753_v8, %v3097_v1  ;;  %v321_v19 = vmul.f32 %v2756_v9, %v3097_v1  ;;  %v322_v20 = vmul.f32 %v2757_v10, %v3097_v1 }
  0x14   : > { %v325_v23 = vmul.f32 %v2764_v15, %v3097_v1  ;;  %v319_v24 = vmul.f32 %v2752_v16, %v3097_v1  ;;  %v746_v29 = vrot.slane %v744_v22, 1  ;;  %v2760_v32 = vunpack.c.l.bf16 %v2783_v2  ;;  %v2786_v16 = vld [vmem:[%s3104_s8 + $0x28] sm:$0xff]  }
  0x15   : > { %v347_v25 = vadd.f32 %v3115_v14, %v324_v17  ;;  %v343_v26 = vadd.f32 %v3115_v14, %v320_v18  ;;  %v344_v27 = vadd.f32 %v3115_v14, %v321_v19  ;;  %v345_v28 = vadd.f32 %v3115_v14, %v322_v20 }
  0x16   : > { %v348_v30 = vadd.f32 %v3115_v14, %v325_v23  ;;  %v342_v31 = vadd.f32 %v3115_v14, %v319_v24  ;;  %v747_v37 = vor.u32 %v746_v29, %v742_v21  ;;  %v323_v40 = vmul.f32 %v2760_v32, %v3097_v1 }
  0x17   : > { %v363_v33 = vmax.f32 %v347_v25, 0.0  ;;  %v359_v34 = vmax.f32 %v343_v26, 0.0  ;;  %v360_v35 = vmax.f32 %v344_v27, 0.0  ;;  %v361_v36 = vmax.f32 %v345_v28, 0.0  ;;  %v3168_v25 = vld [vmem:[%s3104_s8 + $0x38] sm:$0xff]  }
  0x18   : > { %v364_v38 = vmax.f32 %v348_v30, 0.0  ;;  %v358_v39 = vmax.f32 %v342_v31, 0.0  ;;  %797 = vrot.lane.b32.xlu1 %v747_v37, %s3026_s12  ;;  %v346_v47 = vadd.f32 %v3115_v14, %v323_v40  ;;  %v2765_v48 = vunpack.c.h.bf16 %v3110_v11  ;;  %v2785_v11 = vld [vmem:[%s3104_s8 + $0x20] sm:$0xff]  }
  0x19   : > { %v406_v41 = vrot.slane %v363_v33, 7  ;;  %v402_v42 = vrot.slane %v359_v34, 7  ;;  %v403_v43 = vrot.slane %v360_v35, 7  ;;  %v404_v44 = vrot.slane %v361_v36, 7 }
  0x1a   : > { %v407_v45 = vrot.slane %v364_v38, 7  ;;  %v401_v46 = vrot.slane %v358_v39, 7  ;;  %v362_v10 = vmax.f32 %v346_v47, 0.0  ;;  %v326_v15 = vmul.f32 %v2765_v48, %v3097_v1 }
  0x1b   : > { %v439_v49 = vsel %vm433_vm2, 0.0, %v406_v41  ;;  %v455_v50 = vsel %vm433_vm2, %v406_v41, 0.0  ;;  %v435_v51 = vsel %vm433_vm2, 0.0, %v402_v42  ;;  %v451_v52 = vsel %vm433_vm2, %v402_v42, 0.0 }
  0x1c   : > { %v2712_v53 = vpack.c.bf16 %v439_v49, %v439_v49  ;;  %v2713_v54 = vpack.c.bf16 %v455_v50, %v455_v50  ;;  %v2704_v55 = vpack.c.bf16 %v435_v51, %v435_v51  ;;  %v2705_v56 = vpack.c.bf16 %v451_v52, %v451_v52 }
  0x1d   : > { %v436_v57 = vsel %vm433_vm2, 0.0, %v403_v43  ;;  %v452_v58 = vsel %vm433_vm2, %v403_v43, 0.0  ;;  %v437_v59 = vsel %vm433_vm2, 0.0, %v404_v44  ;;  %v453_v60 = vsel %vm433_vm2, %v404_v44, 0.0 }
  0x1e   : > { %605 = vst.msk [vmem:[#allocation2 + $0x38] sm:$0xf] %vm374_vm0, %v2712_v53  ;;  %597 = vst.msk [vmem:[#allocation2 + $0x18] sm:$0xf] %vm374_vm0, %v2704_v55  ;;  %v2706_v61 = vpack.c.bf16 %v436_v57, %v436_v57  ;;  %v2707_v62 = vpack.c.bf16 %v452_v58, %v452_v58  ;;  %v2708_v63 = vpack.c.bf16 %v437_v59, %v437_v59  ;;  %v440_v2 = vsel %vm433_vm2, 0.0, %v407_v45 }
  0x1f   : > { %606 = vst.msk [vmem:[#allocation2 + $0x3c] sm:$0x1] %vm376_vm1, %v2713_v54  ;;  %598 = vst.msk [vmem:[#allocation2 + $0x1c] sm:$0x1] %vm376_vm1, %v2705_v56  ;;  %v2709_v0 = vpack.c.bf16 %v453_v60, %v453_v60  ;;  %v456_v3 = vsel %vm433_vm2, %v407_v45, 0.0  ;;  %v434_v4 = vsel %vm433_vm2, 0.0, %v401_v46  ;;  %v2714_v6 = vpack.c.bf16 %v440_v2, %v440_v2 }
  0x20   : > { %v450_v5 = vsel %vm433_vm2, %v401_v46, 0.0  ;;  %599 = vst.msk [vmem:[#allocation2 + $0x20] sm:$0xf] %vm374_vm0, %v2706_v61  ;;  %601 = vst.msk [vmem:[#allocation2 + $0x28] sm:$0xf] %vm374_vm0, %v2708_v63  ;;  %v2715_v7 = vpack.c.bf16 %v456_v3, %v456_v3  ;;  %v2702_v8 = vpack.c.bf16 %v434_v4, %v434_v4  ;;  %v405_v13 = vrot.slane %v362_v10, 7 }
  0x21   : > { %600 = vst.msk [vmem:[#allocation2 + $0x24] sm:$0x1] %vm376_vm1, %v2707_v62  ;;  %602 = vst.msk [vmem:[#allocation2 + $0x2c] sm:$0x1] %vm376_vm1, %v2709_v0  ;;  %v2703_v9 = vpack.c.bf16 %v450_v5, %v450_v5  ;;  %v2769_v19 = vunpack.c.h.bf16 %v2785_v11  ;;  %v2777_v20 = vunpack.c.h.bf16 %v3161_v12  ;;  %v2773_v24 = vunpack.c.h.bf16 %v2786_v16 }
  0x22   : > { %607 = vst.msk [vmem:[#allocation2 + $0x40] sm:$0xf] %vm374_vm0, %v2714_v6  ;;  %595 = vst.msk [vmem:[#allocation2 + $0x10] sm:$0xf] %vm374_vm0, %v2702_v8  ;;  %v438_v23 = vsel %vm433_vm2, 0.0, %v405_v13  ;;  %v349_v30 = vadd.f32 %v3115_v14, %v326_v15  ;;  %v2772_v39 = vunpack.c.l.bf16 %v2786_v16  ;;  %v2768_v40 = vunpack.c.l.bf16 %v2785_v11 }
  0x23   : > { %608 = vst.msk [vmem:[#allocation2 + $0x44] sm:$0x1] %vm376_vm1, %v2715_v7  ;;  %596 = vst.msk [vmem:[#allocation2 + $0x14] sm:$0x1] %vm376_vm1, %v2703_v9  ;;  %v2710_v29 = vpack.c.bf16 %v438_v23, %v438_v23  ;;  %v328_v38 = vmul.f32 %v2769_v19, %v3097_v1  ;;  %v2780_v41 = vunpack.c.l.bf16 %v3168_v25  ;;  %v454_v43 = vsel %vm433_vm2, %v405_v13, 0.0 }
  0x24   : > { %v332_v44 = vmul.f32 %v2777_v20, %v3097_v1  ;;  %v330_v45 = vmul.f32 %v2773_v24, %v3097_v1  ;;  %v2711_v48 = vpack.c.bf16 %v454_v43, %v454_v43  ;;  %v365_v49 = vmax.f32 %v349_v30, 0.0 }
  0x25   : > { %v631_v17 = vld [vmem:[#allocation2 + $0x38] sm:$0xf]  ;;  %603 = vst.msk [vmem:[#allocation2 + $0x30] sm:$0xf] %vm374_vm0, %v2710_v29  ;;  %v329_v55 = vmul.f32 %v2772_v39, %v3097_v1  ;;  %v3196_v56 = vmul.f32 %v2768_v40, %v3097_v1  ;;  %v3199_v57 = vmul.f32 %v2780_v41, %v3097_v1  ;;  %v351_v61 = vadd.f32 %v3115_v14, %v328_v38 }
  0x26   : > { %v629_v18 = vld [vmem:[#allocation2 + $0x18] sm:$0xf]  ;;  %v2540_v21 = vcombine.low %v631_v17, %v631_v17  ;;  %v637_v26 = vld [vmem:[#allocation2 + $0x1c] sm:$0x1]  ;;  %604 = vst.msk [vmem:[#allocation2 + $0x34] sm:$0x1] %vm376_vm1, %v2711_v48  ;;  %v355_v62 = vadd.f32 %v3115_v14, %v332_v44  ;;  %v2776_v63 = vunpack.c.l.bf16 %v3161_v12  ;;  %v353_v23 = vadd.f32 %v3115_v14, %v330_v45 }
  0x27   : > { %v2538_v22 = vcombine.low %v629_v18, %v629_v18  ;;  %v645_v27 = vld [vmem:[#allocation2 + $0x20] sm:$0xf]  ;;  %v630_v28 = vld [vmem:[#allocation2 + $0x28] sm:$0xf]  ;;  %v639_v31 = vld [vmem:[#allocation2 + $0x3c] sm:$0x1]  ;;  %v3178_v42 = vcombine.low %v629_v18, %v637_v26 }
  0x28   : > { %707 = vrot.lane.b32.xlu1 %v2540_v21, %s3025_s11  ;;  %v2554_v32 = vcombine.low %v645_v27, %v645_v27  ;;  %v638_v33 = vld [vmem:[#allocation2 + $0x2c] sm:$0x1]  ;;  %v2539_v34 = vcombine.low %v630_v28, %v630_v28  ;;  %v653_v35 = vld [vmem:[#allocation2 + $0x24] sm:$0x1]  ;;  %v3183_v46 = vcombine.low %v631_v17, %v639_v31  ;;  %v662_v53 = vld [vmem:[#allocation2 + $0x28] sm:$0xf]  ;;  %v2781_v17 = vunpack.c.h.bf16 %v3168_v25 }
  0x29   : > { %703 = vrot.lane.b32.xlu0 %v2538_v22, %s3025_s11  ;;  %v3173_v36 = vld [vmem:[#allocation2 + $0x40] sm:$0xf]  ;;  %v644_v37 = vld [vmem:[#allocation2 + $0x10] sm:$0xf]  ;;  %v3185_v47 = vcombine.low %v630_v28, %v638_v33  ;;  %v3187_v50 = vcombine.low %v645_v27, %v653_v35  ;;  %v408_v54 = vrot.slane %v365_v49, 7  ;;  %v751_v60 = vshll.u32 %v3178_v42, 16 }
  0x2a   : > { %v2556_v51 = vcombine.low %v3173_v36, %v3173_v36  ;;  %v2553_v52 = vcombine.low %v644_v37, %v644_v37  ;;  %v652_v58 = vld [vmem:[#allocation2 + $0x14] sm:$0x1]  ;;  %v661_v59 = vld [vmem:[#allocation2 + $0x18] sm:$0xf]  ;;  %v670_v0 = vld [vmem:[#allocation2 + $0x2c] sm:$0x1]  ;;  %v2570_v6 = vcombine.low %v662_v53, %v662_v53  ;;  %v334_v12 = vmul.f32 %v2781_v17, %v3097_v1 }
  0x2b   : > { %v441_v2 = vsel %vm433_vm2, 0.0, %v408_v54  ;;  %v457_v3 = vsel %vm433_vm2, %v408_v54, 0.0  ;;  %v765_v4 = vshll.u32 %v3183_v46, 16  ;;  %v758_v5 = vshll.u32 %v3185_v47, 16  ;;  %v655_v11 = vld [vmem:[#allocation2 + $0x44] sm:$0x1] }
  0x2c   : > { %839 = vrot.lane.b32.xlu1 %v2554_v32, %s3027_s13  ;;  %v646_v7 = vld [vmem:[#allocation2 + $0x30] sm:$0xf]  ;;  %v2716_v8 = vpack.c.bf16 %v441_v2, %v441_v2  ;;  %v2717_v9 = vpack.c.bf16 %v457_v3, %v457_v3  ;;  %v887_v10 = vshll.u32 %v3187_v50, 16  ;;  %v3212_v13 = vcombine.low %v644_v37, %v652_v58  ;;  %v669_v19 = vld [vmem:[#allocation2 + $0x1c] sm:$0x1] }
  0x2d   : > { %705 = vrot.lane.b32.xlu0 %v2539_v34, %s3025_s11  ;;  %v2555_v15 = vcombine.low %v646_v7, %v646_v7  ;;  %v2569_v16 = vcombine.low %v661_v59, %v661_v59  ;;  %v3215_v18 = vcombine.low %v662_v53, %v670_v0  ;;  %v749_v20 = vshrl.u32 %v3178_v42, 16  ;;  %v663_v22 = vld [vmem:[#allocation2 + $0x38] sm:$0xf]  ;;  %v671_v24 = vld [vmem:[#allocation2 + $0x3c] sm:$0x1] }
  0x2e   : > { %609 = vst.msk [vmem:[#allocation2 + $0x48] sm:$0xf] %vm374_vm0, %v2716_v8  ;;  %v753_v21 = vrot.slane %v751_v60, 1  ;;  %v763_v26 = vshrl.u32 %v3183_v46, 16  ;;  %v767_v27 = vrot.slane %v765_v4, 1  ;;  %v756_v28 = vshrl.u32 %v3185_v47, 16 }
  0x2f   : > { %610 = vst.msk [vmem:[#allocation2 + $0x4c] sm:$0x1] %vm376_vm1, %v2717_v9  ;;  %v760_v29 = vrot.slane %v758_v5, 1  ;;  %v3224_v30 = vcombine.low %v3173_v36, %v655_v11  ;;  %v654_v31 = vld [vmem:[#allocation2 + $0x34] sm:$0x1]  ;;  %v885_v32 = vshrl.u32 %v3187_v50, 16  ;;  %v3230_v34 = vadd.f32 %v3115_v14, %v329_v55 }
  0x30   : > { %843 = vrot.lane.b32.xlu1 %v2556_v51, %s3027_s13  ;;  %v889_v33 = vrot.slane %v887_v10, 1  ;;  %v3232_v35 = vcombine.low %v661_v59, %v669_v19  ;;  %v2571_v37 = vcombine.low %v663_v22, %v663_v22  ;;  %v880_v38 = vshll.u32 %v3212_v13, 16  ;;  %v2942_v4 = vld [vmem:[%s3776_s3] sm:$0xff]  }
  0x31   : > { %837 = vrot.lane.b32.xlu0 %v2553_v52, %s3027_s13  ;;  %v367_v39 = vmax.f32 %v351_v61, 0.0  ;;  %v754_v36 = vor.u32 %v753_v21, %v749_v20  ;;  %v3235_v40 = vcombine.low %v663_v22, %v671_v24  ;;  %v878_v41 = vshrl.u32 %v3212_v13, 16  ;;  %2810 = vmatprep.subr.bf16.mxu0 %v2942_v4  ;;  %v2943_v24 = vld [vmem:[%s3776_s3 + $0x8] sm:$0xff]  }
  0x32   : > { %v371_v42 = vmax.f32 %v355_v62, 0.0  ;;  %v3238_v43 = vcombine.low %v646_v7, %v654_v31  ;;  %v3240_v44 = vor.u32 %v767_v27, %v763_v26  ;;  %v761_v45 = vor.u32 %v760_v29, %v756_v28  ;;  %2811 = vmatpush3.bf16.msra.mxu0 %v2942_v4 }
  0x33   : > { %v410_v46 = vrot.slane %v367_v39, 7  ;;  %v3243_v47 = vor.u32 %v889_v33, %v885_v32  ;;  %v899_v48 = vshrl.u32 %v3224_v30, 16  ;;  %v901_v49 = vshll.u32 %v3224_v30, 16  ;;  %2812 = vmatprep.subr.bf16.mxu0 %v2943_v24 }
  0x34   : > { %975 = vrot.lane.b32.xlu1 %v2570_v6, %s3028_s14  ;;  %v414_v50 = vrot.slane %v371_v42, 7  ;;  %v882_v52 = vrot.slane %v880_v38, 1  ;;  %v1016_v53 = vshll.u32 %v3232_v35, 16  ;;  %v369_v55 = vmax.f32 %v353_v23, 0.0 }
  0x35   : > { %841 = vrot.lane.b32.xlu0 %v2555_v15, %s3027_s13  ;;  %v664_v51 = vld [vmem:[#allocation2 + $0x48] sm:$0xf]  ;;  %v443_v54 = vsel %vm433_vm2, 0.0, %v410_v46  ;;  %v459_v59 = vsel %vm433_vm2, %v410_v46, 0.0  ;;  %v350_v61 = vadd.f32 %v3115_v14, %v3196_v56  ;;  %v894_v62 = vshll.u32 %v3238_v43, 16 }
  0x36   : > { %v2572_v58 = vcombine.low %v664_v51, %v664_v51  ;;  %v2720_v60 = vpack.c.bf16 %v443_v54, %v443_v54  ;;  %v1023_v0 = vshll.u32 %v3215_v18, 16  ;;  %v2721_v2 = vpack.c.bf16 %v459_v59, %v459_v59  ;;  %v672_v8 = vld [vmem:[#allocation2 + $0x4c] sm:$0x1]  ;;  %2813 = vmatpush3.bf16.msra.mxu0 %v2943_v24  ;;  %v3298_v17 = vld [vmem:[#allocation2 + $0x48] sm:$0xf] }
  0x37   : > { %v356_v3 = vadd.f32 %v3115_v14, %v3199_v57  ;;  %v3261_v5 = vrot.slane %v901_v49, 1  ;;  %v1014_v56 = vshrl.u32 %v3232_v35, 16  ;;  %v447_v6 = vsel %vm433_vm2, 0.0, %v414_v50  ;;  %v640_v42 = vld [vmem:[#allocation2 + $0x4c] sm:$0x1] }
  0x38   : > { %979 = vrot.lane.b32.xlu1 %v2572_v58, %s3028_s14  ;;  %613 = vst.msk [vmem:[#allocation2 + $0x58] sm:$0xf] %vm374_vm0, %v2720_v60  ;;  %v463_v7 = vsel %vm433_vm2, %v414_v50, 0.0  ;;  %v883_v57 = vor.u32 %v882_v52, %v878_v41  ;;  %v1030_v9 = vshll.u32 %v3235_v40, 16  ;;  %v2728_v10 = vpack.c.bf16 %v447_v6, %v447_v6 }
  0x39   : > { %973 = vrot.lane.b32.xlu0 %v2569_v16, %s3028_s14  ;;  %614 = vst.msk [vmem:[#allocation2 + $0x5c] sm:$0x1] %vm376_vm1, %v2721_v2  ;;  %v2729_v11 = vpack.c.bf16 %v463_v7, %v463_v7  ;;  %v1018_v13 = vrot.slane %v1016_v53, 1  ;;  %v412_v15 = vrot.slane %v369_v55, 7  ;;  %v368_v16 = vmax.f32 %v3230_v34, 0.0 }
  0x3a   : > { %v366_v19 = vmax.f32 %v350_v61, 0.0  ;;  %v892_v20 = vshrl.u32 %v3238_v43, 16  ;;  %v896_v21 = vrot.slane %v894_v62, 1  ;;  %621 = vst.msk [vmem:[#allocation2 + $0x78] sm:$0xf] %vm374_vm0, %v2728_v10  ;;  %v372_v22 = vmax.f32 %v356_v3, 0.0 }
  0x3b   : > { %622 = vst.msk [vmem:[#allocation2 + $0x7c] sm:$0x1] %vm376_vm1, %v2729_v11  ;;  %v331_v23 = vmul.f32 %v2776_v63, %v3097_v1  ;;  %v3279_v26 = vcombine.low %v664_v51, %v672_v8  ;;  %v445_v27 = vsel %vm433_vm2, 0.0, %v412_v15  ;;  %v461_v28 = vsel %vm433_vm2, %v412_v15, 0.0 }
  0x3c   : > { %799 = vrot.lane.b32.xlu1 %v754_v36, %s3026_s12  ;;  %v411_v29 = vrot.slane %v368_v16, 7  ;;  %v2724_v31 = vpack.c.bf16 %v445_v27, %v445_v27  ;;  %v2725_v32 = vpack.c.bf16 %v461_v28, %v461_v28  ;;  %v409_v33 = vrot.slane %v366_v19, 7 }
  0x3d   : > { %977 = vrot.lane.b32.xlu0 %v2571_v37, %s3028_s14  ;;  %v415_v37 = vrot.slane %v372_v22, 7  ;;  %v354_v38 = vadd.f32 %v3115_v14, %v331_v23  ;;  %v897_v1 = vor.u32 %v896_v21, %v892_v20  ;;  %v1025_v52 = vrot.slane %v1023_v0, 1 }
  0x3e   : > { %v444_v63 = vsel %vm433_vm2, 0.0, %v411_v29  ;;  %v460_v34 = vsel %vm433_vm2, %v411_v29, 0.0  ;;  %617 = vst.msk [vmem:[#allocation2 + $0x68] sm:$0xf] %vm374_vm0, %v2724_v31  ;;  %v442_v41 = vsel %vm433_vm2, 0.0, %v409_v33  ;;  %v458_v25 = vsel %vm433_vm2, %v409_v33, 0.0 }
  0x3f   : > { %618 = vst.msk [vmem:[#allocation2 + $0x6c] sm:$0x1] %vm376_vm1, %v2725_v32  ;;  %v2722_v39 = vpack.c.bf16 %v444_v63, %v444_v63  ;;  %v2723_v36 = vpack.c.bf16 %v460_v34, %v460_v34  ;;  %v2718_v43 = vpack.c.bf16 %v442_v41, %v442_v41  ;;  %v448_v46 = vsel %vm433_vm2, 0.0, %v415_v37  ;;  %v633_v62 = vld [vmem:[#allocation2 + $0x58] sm:$0xf] }
  0x40   : > { %803 = vrot.lane.b32.xlu1 %v3240_v44, %s3026_s12  ;;  %v464_v49 = vsel %vm433_vm2, %v415_v37, 0.0  ;;  %v2730_v50 = vpack.c.bf16 %v448_v46, %v448_v46  ;;  %v370_v51 = vmax.f32 %v354_v38, 0.0  ;;  %v1021_v44 = vshrl.u32 %v3215_v18, 16  ;;  %v641_v0 = vld [vmem:[#allocation2 + $0x5c] sm:$0x1] }
  0x41   : > { %801 = vrot.lane.b32.xlu0 %v761_v45, %s3026_s12  ;;  %v2719_v45 = vpack.c.bf16 %v458_v25, %v458_v25  ;;  %615 = vst.msk [vmem:[#allocation2 + $0x60] sm:$0xf] %vm374_vm0, %v2722_v39  ;;  %611 = vst.msk [vmem:[#allocation2 + $0x50] sm:$0xf] %vm374_vm0, %v2718_v43  ;;  %v2731_v53 = vpack.c.bf16 %v464_v49, %v464_v49  ;;  %v357_v54 = vadd.f32 %v3115_v14, %v334_v12  ;;  %v635_v20 = vld [vmem:[#allocation2 + $0x78] sm:$0xf] }
  0x42   : > { %616 = vst.msk [vmem:[#allocation2 + $0x64] sm:$0x1] %vm376_vm1, %v2723_v36  ;;  %v1037_v55 = vshll.u32 %v3279_v26, 16  ;;  %v1028_v58 = vshrl.u32 %v3235_v40, 16  ;;  %v1032_v59 = vrot.slane %v1030_v9, 1  ;;  %v2549_v60 = vcombine.low %v3298_v17, %v640_v42 }
  0x43   : > { %612 = vst.msk [vmem:[#allocation2 + $0x54] sm:$0x1] %vm376_vm1, %v2719_v45  ;;  %v904_v18 = vor.u32 %v3261_v5, %v899_v48  ;;  %v1019_v14 = vor.u32 %v1018_v13, %v1014_v56  ;;  %624 = vst.msk [vmem:[#allocation2 + $0x84] sm:$0x1] %vm376_vm1, %v2731_v53  ;;  %v413_v40 = vrot.slane %v370_v51, 7  ;;  %v373_v61 = vmax.f32 %v357_v54, 0.0 }
  0x44   : > { %623 = vst.msk [vmem:[#allocation2 + $0x80] sm:$0xf] %vm374_vm0, %v2730_v50  ;;  %935 = vrot.lane.b32.xlu1 %v3243_v47, %s3029_s19  ;;  %v1026_v2 = vor.u32 %v1025_v52, %v1021_v44  ;;  %v1035_v30 = vshrl.u32 %v3279_v26, 16  ;;  %v1039_v4 = vrot.slane %v1037_v55, 1  ;;  %v1033_v48 = vor.u32 %v1032_v59, %v1028_v58  ;;  %v643_v21 = vld [vmem:[#allocation2 + $0x7c] sm:$0x1] }
  0x45   : > { %933 = vrot.lane.b32.xlu0 %v883_v57, %s3029_s19  ;;  %v446_v3 = vsel %vm433_vm2, 0.0, %v413_v40  ;;  %v462_v47 = vsel %vm433_vm2, %v413_v40, 0.0  ;;  %v772_v5 = vshll.u32 %v2549_v60, 16  ;;  %v2550_v35 = vcombine.low %v633_v62, %v641_v0  ;;  %v634_v8 = vld [vmem:[#allocation2 + $0x68] sm:$0xf] }
  0x46   : > { %v2726_v56 = vpack.c.bf16 %v446_v3, %v446_v3  ;;  %v2727_v6 = vpack.c.bf16 %v462_v47, %v462_v47  ;;  %v416_v7 = vrot.slane %v373_v61, 7  ;;  %v642_v57 = vld [vmem:[#allocation2 + $0x6c] sm:$0x1]  ;;  %v770_v9 = vshrl.u32 %v2549_v60, 16 }
  0x47   : > { %v774_v10 = vrot.slane %v772_v5, 1  ;;  %v1040_v15 = vor.u32 %v1039_v4, %v1035_v30  ;;  %v2541_v16 = vcombine.low %v3298_v17, %v3298_v17  ;;  %v779_v19 = vshll.u32 %v2550_v35, 16  ;;  %v2944_v33 = vld [vmem:[%s3776_s3 + $0x10] ss:$0 sps:$4 sm:$0x33]  }
  0x48   : > { %939 = vrot.lane.b32.xlu1 %v904_v18, %s3029_s19  ;;  %619 = vst.msk [vmem:[#allocation2 + $0x70] sm:$0xf] %vm374_vm0, %v2726_v56  ;;  %v449_v11 = vsel %vm433_vm2, 0.0, %v416_v7  ;;  %v465_v13 = vsel %vm433_vm2, %v416_v7, 0.0  ;;  %v2551_v22 = vcombine.low %v634_v8, %v642_v57  ;;  %v2552_v27 = vcombine.low %v635_v20, %v643_v21  ;;  %2870 = vmatprep.subr.msk.bf16.mxu0 %vm1238_vm3, %v2944_v33  ;;  %v648_v25 = vld [vmem:[#allocation2 + $0x50] sm:$0xf] }
  0x49   : > { %937 = vrot.lane.b32.xlu0 %v897_v1, %s3029_s19  ;;  %620 = vst.msk [vmem:[#allocation2 + $0x74] sm:$0x1] %vm376_vm1, %v2727_v6  ;;  %v2732_v23 = vpack.c.bf16 %v449_v11, %v449_v11  ;;  %v2733_v24 = vpack.c.bf16 %v465_v13, %v465_v13  ;;  %v775_v26 = vor.u32 %v774_v10, %v770_v9  ;;  %v777_v29 = vshrl.u32 %v2550_v35, 16  ;;  %v657_v43 = vld [vmem:[#allocation2 + $0x64] sm:$0x1] }
  0x4a   : > { %v2542_v28 = vcombine.low %v633_v62, %v633_v62  ;;  %v781_v31 = vrot.slane %v779_v19, 1  ;;  %v786_v32 = vshll.u32 %v2551_v22, 16  ;;  %v793_v12 = vshll.u32 %v2552_v27, 16  ;;  %v656_v39 = vld [vmem:[#allocation2 + $0x54] sm:$0x1] }
  0x4b   : > { %625 = vst.msk [vmem:[#allocation2 + $0x88] sm:$0xf] %vm374_vm0, %v2732_v23  ;;  %v2543_v34 = vcombine.low %v634_v8, %v634_v8  ;;  %v784_v37 = vshrl.u32 %v2551_v22, 16  ;;  %v1240_v36 = vsel %vm1238_vm3, %v2944_v33, 0  ;;  %v2544_v41 = vcombine.low %v635_v20, %v635_v20  ;;  %v649_v49 = vld [vmem:[#allocation2 + $0x60] sm:$0xf] }
  0x4c   : > { %1071 = vrot.lane.b32.xlu1 %v1026_v2, %s3030_s20  ;;  %626 = vst.msk [vmem:[#allocation2 + $0x8c] sm:$0x1] %vm376_vm1, %v2733_v24  ;;  %v782_v63 = vor.u32 %v781_v31, %v777_v29  ;;  %v788_v38 = vrot.slane %v786_v32, 1  ;;  %2815 = vmatpush3.bf16.msra.mxu0 %v1240_v36  ;;  %v791_v1 = vshrl.u32 %v2552_v27, 16  ;;  %v795_v17 = vrot.slane %v793_v12, 1 }
  0x4d   : > { %1069 = vrot.lane.b32.xlu0 %v1019_v14, %s3030_s20  ;;  %v2565_v45 = vcombine.low %v648_v25, %v656_v39  ;;  %v2566_v50 = vcombine.low %v649_v49, %v657_v43  ;;  %v2557_v52 = vcombine.low %v648_v25, %v648_v25  ;;  %v659_v53 = vld [vmem:[#allocation2 + $0x84] sm:$0x1]  ;;  %v651_v58 = vld [vmem:[#allocation2 + $0x80] sm:$0xf]  ;;  %v2558_v59 = vcombine.low %v649_v49, %v649_v49  ;;  %v673_v5 = vld [vmem:[#allocation2 + $0x5c] sm:$0x1] }
  0x4e   : > { %v789_v42 = vor.u32 %v788_v38, %v784_v37  ;;  %v796_v44 = vor.u32 %v795_v17, %v791_v1  ;;  %v2568_v60 = vcombine.low %v651_v58, %v659_v53  ;;  %v2560_v0 = vcombine.low %v651_v58, %v651_v58  ;;  %v665_v35 = vld [vmem:[#allocation2 + $0x58] sm:$0xf]  ;;  %v674_v9 = vld [vmem:[#allocation2 + $0x6c] sm:$0x1]  ;;  %v675_v10 = vld [vmem:[#allocation2 + $0x7c] sm:$0x1] }
  0x4f   : > { %v650_v51 = vld [vmem:[#allocation2 + $0x70] sm:$0xf]  ;;  %v908_v55 = vshll.u32 %v2565_v45, 16  ;;  %v915_v18 = vshll.u32 %v2566_v50, 16  ;;  %v906_v40 = vshrl.u32 %v2565_v45, 16  ;;  %v913_v2 = vshrl.u32 %v2566_v50, 16 }
  0x50   : > { %1075 = vrot.lane.b32.xlu1 %v1040_v15, %s3030_s20  ;;  %v658_v46 = vld [vmem:[#allocation2 + $0x74] sm:$0x1]  ;;  %v2559_v14 = vcombine.low %v650_v51, %v650_v51  ;;  %v929_v30 = vshll.u32 %v2568_v60, 16  ;;  %v2581_v56 = vcombine.low %v665_v35, %v673_v5  ;;  %v927_v7 = vshrl.u32 %v2568_v60, 16  ;;  %v666_v11 = vld [vmem:[#allocation2 + $0x68] sm:$0xf] }
  0x51   : > { %1073 = vrot.lane.b32.xlu0 %v1033_v48, %s3030_s20  ;;  %v2567_v54 = vcombine.low %v650_v51, %v658_v46  ;;  %v910_v61 = vrot.slane %v908_v55, 1  ;;  %v917_v3 = vrot.slane %v915_v18, 1  ;;  %v2582_v13 = vcombine.low %v666_v11, %v674_v9  ;;  %v667_v15 = vld [vmem:[#allocation2 + $0x78] sm:$0xf] }
  0x52   : > { %v931_v8 = vrot.slane %v929_v30, 1  ;;  %v2573_v19 = vcombine.low %v665_v35, %v665_v35  ;;  %v2583_v20 = vcombine.low %v667_v15, %v675_v10  ;;  %v1044_v21 = vshll.u32 %v2581_v56, 16  ;;  %v668_v23 = vld [vmem:[#allocation2 + $0x88] sm:$0xf] }
  0x53   : > { %v922_v62 = vshll.u32 %v2567_v54, 16  ;;  %v911_v47 = vor.u32 %v910_v61, %v906_v40  ;;  %v920_v4 = vshrl.u32 %v2567_v54, 16  ;;  %v918_v6 = vor.u32 %v917_v3, %v913_v2  ;;  %v676_v22 = vld [vmem:[#allocation2 + $0x8c] sm:$0x1] }
  0x54   : > { %711 = vrot.lane.b32.xlu1 %v2542_v28, %s3025_s11  ;;  %v2575_v24 = vcombine.low %v667_v15, %v667_v15  ;;  %v1042_v27 = vshrl.u32 %v2581_v56, 16  ;;  %v2574_v28 = vcombine.low %v666_v11, %v666_v11  ;;  %v2584_v29 = vcombine.low %v668_v23, %v676_v22 }
  0x55   : > { %709 = vrot.lane.b32.xlu0 %v2541_v16, %s3025_s11  ;;  %v924_v48 = vrot.slane %v922_v62, 1  ;;  %v932_v16 = vor.u32 %v931_v8, %v927_v7  ;;  %v1046_v31 = vrot.slane %v1044_v21, 1  ;;  %v1058_v32 = vshll.u32 %v2583_v20, 16 }
  0x56   : > { %v1049_v33 = vshrl.u32 %v2582_v13, 16  ;;  %v1065_v38 = vshll.u32 %v2584_v29, 16 }
  0x57   : > { %v925_v57 = vor.u32 %v924_v48, %v920_v4  ;;  %v1047_v37 = vor.u32 %v1046_v31, %v1042_v27  ;;  %v1060_v39 = vrot.slane %v1058_v32, 1 }
  0x58   : > { %807 = vrot.lane.b32.xlu1 %v782_v63, %s3026_s12  ;;  %v1056_v63 = vshrl.u32 %v2583_v20, 16  ;;  %v1067_v25 = vrot.slane %v1065_v38, 1 }
  0x59   : > { %805 = vrot.lane.b32.xlu0 %v775_v26, %s3026_s12  ;;  %v1051_v26 = vshll.u32 %v2582_v13, 16 }
  0x5a   : > { %v1061_v1 = vor.u32 %v1060_v39, %v1056_v63 }
  0x5b   : > { %v1053_v12 = vrot.slane %v1051_v26, 1 }
  0x5c   : > { %715 = vrot.lane.b32.xlu1 %v2544_v41, %s3025_s11  ;;  %v1063_v41 = vshrl.u32 %v2584_v29, 16 }
  0x5d   : > { %713 = vrot.lane.b32.xlu0 %v2543_v34, %s3025_s11  ;;  %v2576_v34 = vcombine.low %v668_v23, %v668_v23  ;;  %v1054_v36 = vor.u32 %v1053_v12, %v1049_v33  ;;  %s3036_s11 = smov 32  }
  0x5e   : > { %v1068_v17 = vor.u32 %v1067_v25, %v1063_v41 }
  0x60   : > { %811 = vrot.lane.b32.xlu1 %v796_v44, %s3026_s12 }
  0x61   : > { %809 = vrot.lane.b32.xlu0 %v789_v42, %s3026_s12 }
  0x64   : > { %847 = vrot.lane.b32.xlu1 %v2558_v59, %s3027_s13 }
  0x65   : > { %845 = vrot.lane.b32.xlu0 %v2557_v52, %s3027_s13 }
  0x68   : > { %851 = vrot.lane.b32.xlu1 %v2560_v0, %s3027_s13 }
  0x69   : > { %849 = vrot.lane.b32.xlu0 %v2559_v14, %s3027_s13 }
  0x6c   : > { %943 = vrot.lane.b32.xlu1 %v918_v6, %s3029_s19 }
  0x6d   : > { %941 = vrot.lane.b32.xlu0 %v911_v47, %s3029_s19 }
  0x70   : > { %947 = vrot.lane.b32.xlu1 %v932_v16, %s3029_s19 }
  0x71   : > { %945 = vrot.lane.b32.xlu0 %v925_v57, %s3029_s19 }
  0x74   : > { %983 = vrot.lane.b32.xlu1 %v2574_v28, %s3028_s14 }
  0x75   : > { %981 = vrot.lane.b32.xlu0 %v2573_v19, %s3028_s14 }
  0x78   : > { %987 = vrot.lane.b32.xlu1 %v2576_v34, %s3028_s14 }
  0x79   : > { %985 = vrot.lane.b32.xlu0 %v2575_v24, %s3028_s14 }
  0x7c   : > { %1079 = vrot.lane.b32.xlu1 %v1054_v36, %s3030_s20 }
  0x7d   : > { %1077 = vrot.lane.b32.xlu0 %v1047_v37, %s3030_s20 }
  0x80   : > { %1083 = vrot.lane.b32.xlu1 %v1068_v17, %s3030_s20 }
  0x81   : > { %1081 = vrot.lane.b32.xlu0 %v1061_v1, %s3030_s20 }
  0x82   : > { %v702_v43 = vpop.permute.xlu0 %701 }
  0x8a   : > { %v798_v42 = vpop.permute.xlu1 %797 }
  0x8b   : > { %v1088_v62 = vsel %vm1085_vm4, %v702_v43, %v798_v42 }
  0x9a   : > { %v708_v45 = vpop.permute.xlu1 %707 }
  0x9b   : > { %v704_v46 = vpop.permute.xlu0 %703 }
  0x9e   : > { %v840_v49 = vpop.permute.xlu1 %839 }
  0x9f   : > { %v706_v50 = vpop.permute.xlu0 %705 }
  0xa2   : > { %v844_v51 = vpop.permute.xlu1 %843 }
  0xa3   : > { %v838_v44 = vpop.permute.xlu0 %837 }
  0xa4   : > { %v1112_v2 = vsel %vm1110_vm5, %v1088_v62, %v838_v44 }
  0xa6   : > { %v976_v53 = vpop.permute.xlu1 %975 }
  0xa7   : > { %v842_v52 = vpop.permute.xlu0 %841 }
  0xaa   : > { %v980_v55 = vpop.permute.xlu1 %979 }
  0xab   : > { %v974_v54 = vpop.permute.xlu0 %973 }
  0xae   : > { %v800_v59 = vpop.permute.xlu1 %799 }
  0xaf   : > { %v978_v58 = vpop.permute.xlu0 %977  ;;  %v1091_v0 = vsel %vm1085_vm4, %v704_v46, %v800_v59 }
  0xb0   : > { %v1114_v30 = vsel %vm1110_vm5, %v1091_v0, %v840_v49 }
  0xb2   : > { %v804_v18 = vpop.permute.xlu1 %803 }
  0xb3   : > { %v802_v60 = vpop.permute.xlu0 %801  ;;  %v1097_v5 = vsel %vm1085_vm4, %v708_v45, %v804_v18 }
  0xb4   : > { %v1094_v3 = vsel %vm1085_vm4, %v706_v50, %v802_v60  ;;  %v1118_v57 = vsel %vm1110_vm5, %v1097_v5, %v844_v51 }
  0xb5   : > { %v1116_v56 = vsel %vm1110_vm5, %v1094_v3, %v842_v52 }
  0xb6   : > { %v936_v40 = vpop.permute.xlu1 %935 }
  0xb7   : > { %v934_v14 = vpop.permute.xlu0 %933  ;;  %v1131_v35 = vsel %vm1127_vm6, %v1114_v30, %v936_v40 }
  0xb8   : > { %v1129_v47 = vsel %vm1127_vm6, %v1112_v2, %v934_v14  ;;  %v1148_v10 = vsel %vm1144_vm7, %v1131_v35, %v976_v53  ;;  %v1506_v35 = vld [vmem:[#allocation3 + $0x48] sm:$0xf] }
  0xb9   : > { %v1146_v6 = vsel %vm1144_vm7, %v1129_v47, %v974_v54 }
  0xba   : > { %v940_v4 = vpop.permute.xlu1 %939 }
  0xbb   : > { %v938_v61 = vpop.permute.xlu0 %937  ;;  %v1135_v13 = vsel %vm1127_vm6, %v1118_v57, %v940_v4 }
  0xbc   : > { %v1133_v7 = vsel %vm1127_vm6, %v1116_v56, %v938_v61  ;;  %v1152_v21 = vsel %vm1144_vm7, %v1135_v13, %v980_v55  ;;  %v1514_v56 = vld [vmem:[#allocation3 + $0x4c] sm:$0x1] }
  0xbd   : > { %v1150_v19 = vsel %vm1144_vm7, %v1133_v7, %v978_v58  ;;  %v2668_v7 = vcombine.low %v1506_v35, %v1514_v56 }
  0xbe   : > { %v1072_v9 = vpop.permute.xlu1 %1071 }
  0xbf   : > { %v1070_v48 = vpop.permute.xlu0 %1069  ;;  %v1165_v15 = vsel %vm1161_vm8, %v1148_v10, %v1072_v9  ;;  %v2660_v9 = vcombine.low %v1506_v35, %v1506_v35  ;;  %v1983_v10 = vshll.u32 %v2668_v7, 16  ;;  %v1981_v13 = vshrl.u32 %v2668_v7, 16 }
  0xc0   : > { %v1163_v8 = vsel %vm1161_vm8, %v1146_v6, %v1070_v48  ;;  %v3412_v6 = vld [vmem:[#allocation3] sm:$0xf] }
  0xc1   : > { %v2586_v16 = vcombine.low %v1163_v8, %v1165_v15  ;;  %v1458_v8 = vld [vmem:[#allocation3 + $0x4] sm:$0x1]  ;;  %1905 = vrot.lane.b32.xlu1 %v2660_v9, %s3031_s23  ;;  %v1985_v15 = vrot.slane %v1983_v10, 1 }
  0xc2   : > { %v1076_v22 = vpop.permute.xlu1 %1075  ;;  %v2613_v57 = vcombine.low %v3412_v6, %v1458_v8 }
  0xc3   : > { %v1074_v11 = vpop.permute.xlu0 %1073  ;;  %2816 = vmatprep.mubr.msk.bf16.mxu0 %vm1225_vm9, %v2586_v16  ;;  %v1169_v24 = vsel %vm1161_vm8, %v1152_v21, %v1076_v22  ;;  %v1522_v22 = vld [vmem:[#allocation3 + $0x48] sm:$0xe] }
  0xc4   : > { %v1167_v20 = vsel %vm1161_vm8, %v1150_v19, %v1074_v11  ;;  %v1566_v11 = vshll.u32 %v2613_v57, 16  ;;  %v1564_v16 = vshrl.u32 %v2613_v57, 16 }
  0xc5   : > { %v2587_v26 = vcombine.low %v1167_v20, %v1169_v24  ;;  %v1986_v20 = vor.u32 %v1985_v15, %v1981_v13  ;;  %v2676_v24 = vcombine.low %v1522_v22, %v1514_v56 }
  0xc6   : > { %v712_v27 = vpop.permute.xlu1 %711  ;;  %v1568_v19 = vrot.slane %v1566_v11, 1 }
  0xc7   : > { %v710_v23 = vpop.permute.xlu0 %709  ;;  %2817 = vmatmul.mubr.msk.bf16.vlgmr.msra.gmra.mrb[0].mxu0 %vm1225_vm9, %v2587_v26  ;;  %2001 = vrot.lane.b32.xlu1 %v1986_v20, %s3032_s27 }
  0xc8   : > { %v1569_v21 = vor.u32 %v1568_v19, %v1564_v16 }
  0xca   : > { %v808_v29 = vpop.permute.xlu1 %807  ;;  %1619 = vrot.lane.b32.xlu0 %v1569_v21, %s3027_s13 }
  0xcb   : > { %v806_v28 = vpop.permute.xlu0 %805  ;;  %v1103_v50 = vsel %vm1085_vm4, %v712_v27, %v808_v29  ;;  %v2034_v27 = vrot.slane %v2676_v24, 1  ;;  %v3423_v29 = vld [vmem:[%s3777_s4] ss:$0 sm:$0xff] }
  0xcc   : > { %v1100_v43 = vsel %vm1085_vm4, %v710_v23, %v806_v28  ;;  %v1466_v23 = vld [vmem:[#allocation3] sm:$0xe] }
  0xcd   : > { %v2621_v26 = vcombine.low %v1466_v23, %v1458_v8  ;;  %2049 = vrot.lane.b32.xlu1 %v2034_v27, %s3033_s28 }
  0xce   : > { %v716_v32 = vpop.permute.xlu1 %715 }
  0xcf   : > { %v714_v31 = vpop.permute.xlu0 %713  ;;  %v1659_v28 = vrot.slane %v2621_v26, 1 }
  0xd1   : > { %1667 = vrot.lane.b32.xlu0 %v1659_v28, %s3029_s19 }
  0xd2   : > { %v812_v12 = vpop.permute.xlu1 %811 }
  0xd3   : > { %v810_v33 = vpop.permute.xlu0 %809  ;;  %v1109_v14 = vsel %vm1085_vm4, %v716_v32, %v812_v12 }
  0xd4   : > { %v1106_v53 = vsel %vm1085_vm4, %v714_v31, %v810_v33 }
  0xd6   : > { %v848_v34 = vpop.permute.xlu1 %847 }
  0xd7   : > { %v846_v63 = vpop.permute.xlu0 %845  ;;  %v1122_v44 = vsel %vm1110_vm5, %v1103_v50, %v848_v34 }
  0xd8   : > { %v1120_v45 = vsel %vm1110_vm5, %v1100_v43, %v846_v63 }
  0xda   : > { %v852_v38 = vpop.permute.xlu1 %851 }
  0xdb   : > { %v850_v37 = vpop.permute.xlu0 %849  ;;  %v1126_v62 = vsel %vm1110_vm5, %v1109_v14, %v852_v38 }
  0xdc   : > { %v1124_v58 = vsel %vm1110_vm5, %v1106_v53, %v850_v37 }
  0xde   : > { %v944_v36 = vpop.permute.xlu1 %943 }
  0xdf   : > { %v942_v39 = vpop.permute.xlu0 %941  ;;  %v1139_v54 = vsel %vm1127_vm6, %v1122_v44, %v944_v36 }
  0xe0   : > { %v1137_v51 = vsel %vm1127_vm6, %v1120_v45, %v942_v39 }
  0xe2   : > { %v948_v25 = vpop.permute.xlu1 %947 }
  0xe3   : > { %v946_v41 = vpop.permute.xlu0 %945  ;;  %v1143_v3 = vsel %vm1127_vm6, %v1126_v62, %v948_v25 }
  0xe4   : > { %v1141_v40 = vsel %vm1127_vm6, %v1124_v58, %v946_v41 }
  0xe6   : > { %v984_v17 = vpop.permute.xlu1 %983 }
  0xe7   : > { %v982_v1 = vpop.permute.xlu0 %981  ;;  %v1156_v59 = vsel %vm1144_vm7, %v1139_v54, %v984_v17 }
  0xe8   : > { %v1154_v52 = vsel %vm1144_vm7, %v1137_v51, %v982_v1 }
  0xea   : > { %v988_v46 = vpop.permute.xlu1 %987 }
  0xeb   : > { %v986_v42 = vpop.permute.xlu0 %985  ;;  %v1160_v30 = vsel %vm1144_vm7, %v1143_v3, %v988_v46 }
  0xec   : > { %v1158_v0 = vsel %vm1144_vm7, %v1141_v40, %v986_v42 }
  0xee   : > { %v1080_v60 = vpop.permute.xlu1 %1079 }
  0xef   : > { %v1078_v49 = vpop.permute.xlu0 %1077  ;;  %v1173_v61 = vsel %vm1161_vm8, %v1156_v59, %v1080_v60 }
  0xf0   : > { %v1171_v55 = vsel %vm1161_vm8, %v1154_v52, %v1078_v49 }
  0xf1   : > { %v2588_v2 = vcombine.low %v1171_v55, %v1173_v61 }
  0xf2   : > { %v1084_v4 = vpop.permute.xlu1 %1083 }
  0xf3   : > { %v1082_v18 = vpop.permute.xlu0 %1081  ;;  %2820 = vmatprep.mubr.msk.bf16.mxu0 %vm1225_vm9, %v2588_v2  ;;  %v1177_v48 = vsel %vm1161_vm8, %v1160_v30, %v1084_v4 }
  0xf4   : > { %v1175_v47 = vsel %vm1161_vm8, %v1158_v0, %v1082_v18 }
  0xf5   : > { %v2589_v5 = vcombine.low %v1175_v47, %v1177_v48 }
  0xf7   : > { %2821 = vmatmul.mubr.msk.bf16.gmra.mrb[4].mxu0 %vm1225_vm9, %v2589_v5 }
 0x19a   : > { %v2818_v31 = vpop.f32.mrb[0].mxu0 }
 0x19b   : > { %v1285_v32 = vadd.f32 %v2818_v31, %v3423_v29  ;;  %v1276_v33 = vpop.f32.mrb[1].mxu0 }
 0x19c   : > { %v1277_v12 = vadd.f32 %v3423_v29, %v1276_v33  ;;  %v2819_v63 = vpop.f32.mrb[2].mxu0 }
 0x19d   : > { %v1309_v34 = vmax.f32 %v1285_v32, 0.0  ;;  %v1288_v37 = vadd.f32 %v2819_v63, %v3423_v29  ;;  %v1279_v38 = vpop.f32.mrb[3].mxu0 }
 0x19e   : > { %v1307_v39 = vmax.f32 %v1277_v12, 0.0  ;;  %v1280_v36 = vadd.f32 %v3423_v29, %v1279_v38 }
 0x19f   : > { %v1330_v41 = vrot.slane %v1309_v34, 7  ;;  %v1310_v25 = vmax.f32 %v1288_v37, 0.0 }
 0x1a0   : > { %v1328_v1 = vrot.slane %v1307_v39, 7  ;;  %v1308_v17 = vmax.f32 %v1280_v36, 0.0 }
 0x1a1   : > { %v1346_v42 = vsel %vm433_vm2, 0.0, %v1330_v41  ;;  %v1354_v43 = vsel %vm433_vm2, %v1330_v41, 0.0  ;;  %v1331_v45 = vrot.slane %v1310_v25, 7 }
 0x1a2   : > { %v2738_v46 = vpack.c.bf16 %v1346_v42, %v1346_v42  ;;  %v2739_v49 = vpack.c.bf16 %v1354_v43, %v1354_v43  ;;  %v1344_v50 = vsel %vm433_vm2, 0.0, %v1328_v1  ;;  %v1352_v51 = vsel %vm433_vm2, %v1328_v1, 0.0 }
 0x1a3   : > { %v2734_v44 = vpack.c.bf16 %v1344_v50, %v1344_v50  ;;  %v2735_v52 = vpack.c.bf16 %v1352_v51, %v1352_v51  ;;  %v1347_v53 = vsel %vm433_vm2, 0.0, %v1331_v45  ;;  %v1355_v54 = vsel %vm433_vm2, %v1331_v45, 0.0 }
 0x1a4   : > { %1429 = vst.msk [vmem:[#allocation3 + $0x18] sm:$0xf] %vm374_vm0, %v2738_v46  ;;  %v2740_v55 = vpack.c.bf16 %v1347_v53, %v1347_v53  ;;  %v2741_v58 = vpack.c.bf16 %v1355_v54, %v1355_v54  ;;  %v1329_v59 = vrot.slane %v1308_v17, 7 }
 0x1a5   : > { %1430 = vst.msk [vmem:[#allocation3 + $0x1c] sm:$0x1] %vm376_vm1, %v2739_v49  ;;  %1426 = vst.msk [vmem:[#allocation3 + $0xc] sm:$0x1] %vm376_vm1, %v2735_v52 }
 0x1a6   : > { %1425 = vst.msk [vmem:[#allocation3 + $0x8] sm:$0xf] %vm374_vm0, %v2734_v44  ;;  %1431 = vst.msk [vmem:[#allocation3 + $0x20] sm:$0xf] %vm374_vm0, %v2740_v55  ;;  %v1345_v60 = vsel %vm433_vm2, 0.0, %v1329_v59  ;;  %v1353_v18 = vsel %vm433_vm2, %v1329_v59, 0.0 }
 0x1a7   : > { %1432 = vst.msk [vmem:[#allocation3 + $0x24] sm:$0x1] %vm376_vm1, %v2741_v58  ;;  %v2736_v14 = vpack.c.bf16 %v1345_v60, %v1345_v60  ;;  %v2737_v40 = vpack.c.bf16 %v1353_v18, %v1353_v18 }
 0x1a9   : > { %1427 = vst.msk [vmem:[#allocation3 + $0x10] sm:$0xf] %vm374_vm0, %v2736_v14 }
 0x1aa   : > { %1428 = vst.msk [vmem:[#allocation3 + $0x14] sm:$0x1] %vm376_vm1, %v2737_v40 }
 0x1ab   : > { %v3445_v61 = vld [vmem:[#allocation3 + $0x18] sm:$0xf] }
 0x1ac   : > { %v1476_v62 = vld [vmem:[#allocation3 + $0x18] sm:$0xf]  ;;  %v2654_v0 = vcombine.low %v3445_v61, %v3445_v61  ;;  %v1461_v3 = vld [vmem:[#allocation3 + $0x1c] sm:$0x1]  ;;  %v1482_v57 = vld [vmem:[#allocation3 + $0xc] sm:$0x1] }
 0x1ad   : > { %v2631_v2 = vcombine.low %v1476_v62, %v1476_v62  ;;  %v1469_v47 = vld [vmem:[#allocation3 + $0x18] sm:$0xe]  ;;  %v1474_v4 = vld [vmem:[#allocation3 + $0x8] sm:$0xf]  ;;  %v1484_v48 = vld [vmem:[#allocation3 + $0x1c] sm:$0x1] }
 0x1ae   : > { %v2624_v30 = vcombine.low %v1469_v47, %v1461_v3  ;;  %1893 = vrot.lane.b32.xlu1 %v2654_v0, %s3031_s23  ;;  %v1492_v5 = vld [vmem:[#allocation3 + $0x18] sm:$0xe]  ;;  %v2629_v56 = vcombine.low %v1474_v4, %v1474_v4  ;;  %v3451_v7 = vld [vmem:[#allocation3 + $0x20] sm:$0xf]  ;;  %v1490_v9 = vld [vmem:[#allocation3 + $0x8] sm:$0xe]  ;;  %v2639_v33 = vcombine.low %v1476_v62, %v1484_v48  ;;  %v2637_v1 = vcombine.low %v1474_v4, %v1482_v57 }
 0x1af   : > { %1711 = vrot.lane.b32.xlu0 %v2631_v2, %s3034_s9  ;;  %v2647_v8 = vcombine.low %v1492_v5, %v1484_v48  ;;  %v1459_v10 = vld [vmem:[#allocation3 + $0xc] sm:$0x1]  ;;  %v1467_v11 = vld [vmem:[#allocation3 + $0x8] sm:$0xe]  ;;  %v2632_v13 = vcombine.low %v3451_v7, %v3451_v7  ;;  %v2645_v16 = vcombine.low %v1490_v9, %v1482_v57  ;;  %v3459_v20 = vld [vmem:[#allocation3 + $0x18] sm:$0xf] }
 0x1b0   : > { %v1662_v35 = vrot.slane %v2624_v30, 1  ;;  %v2622_v19 = vcombine.low %v1467_v11, %v1459_v10  ;;  %v3461_v21 = vld [vmem:[#allocation3 + $0x10] sm:$0xf]  ;;  %v1462_v26 = vld [vmem:[#allocation3 + $0x24] sm:$0x1]  ;;  %v2616_v32 = vcombine.low %v3459_v20, %v1461_v3  ;;  %v1764_v43 = vshll.u32 %v2639_v33, 16 }
 0x1b1   : > { %v1845_v15 = vrot.slane %v2647_v8, 1  ;;  %v1843_v22 = vrot.slane %v2645_v16, 1  ;;  %v3463_v24 = vld [vmem:[#allocation3 + $0x10] sm:$0xf]  ;;  %v1470_v27 = vld [vmem:[#allocation3 + $0x20] sm:$0xe]  ;;  %v2653_v63 = vcombine.low %v3461_v21, %v3461_v21 }
 0x1b2   : > { %1673 = vrot.lane.b32.xlu1 %v1662_v35, %s3029_s19  ;;  %v1660_v23 = vrot.slane %v2622_v19, 1  ;;  %v3465_v28 = vld [vmem:[#allocation3 + $0x24] sm:$0x1]  ;;  %v1493_v31 = vld [vmem:[#allocation3 + $0x20] sm:$0xe]  ;;  %v2630_v34 = vcombine.low %v3463_v24, %v3463_v24  ;;  %v2625_v37 = vcombine.low %v1470_v27, %v1462_v26  ;;  %v1587_v51 = vshll.u32 %v2616_v32, 16 }
 0x1b3   : > { %1707 = vrot.lane.b32.xlu0 %v2629_v56, %s3034_s9  ;;  %v3470_v12 = vld [vmem:[#allocation3 + $0x8] sm:$0xf]  ;;  %v2648_v38 = vcombine.low %v1493_v31, %v3465_v28  ;;  %v3477_v39 = vld [vmem:[#allocation3 + $0x14] sm:$0x1]  ;;  %v1468_v36 = vld [vmem:[#allocation3 + $0x10] sm:$0xe] }
 0x1b4   : > { %v3479_v41 = vld [vmem:[#allocation3 + $0x14] sm:$0x1]  ;;  %v1491_v25 = vld [vmem:[#allocation3 + $0x10] sm:$0xe]  ;;  %v2614_v17 = vcombine.low %v3470_v12, %v1459_v10  ;;  %v2623_v42 = vcombine.low %v1468_v36, %v3477_v39  ;;  %v3485_v45 = vld [vmem:[#allocation3 + $0x20] sm:$0xf] }
 0x1b5   : > { %v1663_v46 = vrot.slane %v2625_v37, 1  ;;  %v1846_v49 = vrot.slane %v2648_v38, 1  ;;  %v2646_v50 = vcombine.low %v1491_v25, %v3479_v41  ;;  %v2617_v44 = vcombine.low %v3485_v45, %v1462_v26 }
 0x1b6   : > { %1713 = vrot.lane.b32.xlu1 %v2632_v13, %s3034_s9  ;;  %v1661_v52 = vrot.slane %v2623_v42, 1  ;;  %v1766_v53 = vrot.slane %v1764_v43, 1  ;;  %v1589_v55 = vrot.slane %v1587_v51, 1  ;;  %v1750_v58 = vshll.u32 %v2637_v1, 16 }
 0x1b7   : > { %1855 = vrot.lane.b32.xlu0 %v1845_v15, %s3035_s10  ;;  %v1844_v54 = vrot.slane %v2646_v50, 1  ;;  %v1573_v59 = vshll.u32 %v2614_v17, 16  ;;  %v1762_v60 = vshrl.u32 %v2639_v33, 16  ;;  %v1585_v18 = vshrl.u32 %v2616_v32, 16 }
 0x1b8   : > { %v1752_v62 = vrot.slane %v1750_v58, 1  ;;  %v1594_v2 = vshll.u32 %v2617_v44, 16  ;;  %v1748_v47 = vshrl.u32 %v2637_v1, 16  ;;  %v1571_v30 = vshrl.u32 %v2614_v17, 16 }
 0x1b9   : > { %v1767_v14 = vor.u32 %v1766_v53, %v1762_v60  ;;  %v1590_v40 = vor.u32 %v1589_v55, %v1585_v18  ;;  %v1575_v0 = vrot.slane %v1573_v59, 1  ;;  %v1592_v16 = vshrl.u32 %v2617_v44, 16 }
 0x1ba   : > { %1669 = vrot.lane.b32.xlu1 %v1660_v23, %s3029_s19  ;;  %v1753_v56 = vor.u32 %v1752_v62, %v1748_v47  ;;  %v1596_v57 = vrot.slane %v1594_v2, 1  ;;  %v2640_v17 = vcombine.low %v3451_v7, %v3465_v28  ;;  %v2638_v28 = vcombine.low %v3463_v24, %v3479_v41 }
 0x1bb   : > { %1851 = vrot.lane.b32.xlu0 %v1843_v22, %s3035_s10  ;;  %v1576_v8 = vor.u32 %v1575_v0, %v1571_v30 }
 0x1bc   : > { %v1597_v27 = vor.u32 %v1596_v57, %v1592_v16  ;;  %v1771_v53 = vshll.u32 %v2640_v17, 16  ;;  %v1757_v58 = vshll.u32 %v2638_v28, 16 }
 0x1be   : > { %1709 = vrot.lane.b32.xlu1 %v2630_v34, %s3034_s9  ;;  %v1773_v41 = vrot.slane %v1771_v53, 1  ;;  %v1759_v62 = vrot.slane %v1757_v58, 1 }
 0x1bf   : > { %1891 = vrot.lane.b32.xlu0 %v2653_v63, %s3031_s23 }
 0x1c2   : > { %1857 = vrot.lane.b32.xlu1 %v1846_v49, %s3035_s10  ;;  %v3512_v49 = vld [vmem:[#allocation3 + $0x10] sm:$0xf] }
 0x1c3   : > { %1675 = vrot.lane.b32.xlu0 %v1663_v46, %s3029_s19 }
 0x1c6   : > { %1853 = vrot.lane.b32.xlu1 %v1844_v54, %s3035_s10 }
 0x1c7   : > { %1671 = vrot.lane.b32.xlu0 %v1661_v52, %s3029_s19  ;;  %v2615_v52 = vcombine.low %v3512_v49, %v3477_v39  ;;  %v1769_v39 = vshrl.u32 %v2640_v17, 16 }
 0x1c9   : > { %v1580_v60 = vshll.u32 %v2615_v52, 16 }
 0x1ca   : > { %1625 = vrot.lane.b32.xlu1 %v1590_v40, %s3027_s13  ;;  %v2822_v3 = vpop.f32.mrb[4].mxu0 }
 0x1cb   : > { %1807 = vrot.lane.b32.xlu0 %v1767_v14, %s3036_s11  ;;  %v1301_v4 = vadd.f32 %v2822_v3, %v3423_v29  ;;  %v1292_v48 = vpop.f32.mrb[5].mxu0  ;;  %v1774_v14 = vor.u32 %v1773_v41, %v1769_v39  ;;  %v1582_v0 = vrot.slane %v1580_v60, 1 }
 0x1cc   : > { %v1293_v5 = vadd.f32 %v3423_v29, %v1292_v48  ;;  %v2823_v35 = vpop.f32.mrb[6].mxu0  ;;  %v1578_v48 = vshrl.u32 %v2615_v52, 16 }
 0x1cd   : > { %v1313_v9 = vmax.f32 %v1301_v4, 0.0  ;;  %v1304_v10 = vadd.f32 %v2823_v35, %v3423_v29  ;;  %v1295_v11 = vpop.f32.mrb[7].mxu0  ;;  %v1755_v4 = vshrl.u32 %v2638_v28, 16 }
 0x1ce   : > { %v1311_v13 = vmax.f32 %v1293_v5, 0.0  ;;  %v1296_v15 = vadd.f32 %v3423_v29, %v1295_v11  ;;  %1621 = vrot.lane.b32.xlu1 %v1576_v8, %s3027_s13  ;;  %v1583_v35 = vor.u32 %v1582_v0, %v1578_v48 }
 0x1cf   : > { %1803 = vrot.lane.b32.xlu0 %v1753_v56, %s3036_s11  ;;  %v1334_v19 = vrot.slane %v1313_v9, 7  ;;  %v1314_v22 = vmax.f32 %v1304_v10, 0.0  ;;  %v1760_v5 = vor.u32 %v1759_v62, %v1755_v4 }
 0x1d0   : > { %v1332_v23 = vrot.slane %v1311_v13, 7  ;;  %v1312_v26 = vmax.f32 %v1296_v15, 0.0 }
 0x1d1   : > { %v1350_v31 = vsel %vm433_vm2, 0.0, %v1334_v19  ;;  %v1358_v32 = vsel %vm433_vm2, %v1334_v19, 0.0  ;;  %v1335_v33 = vrot.slane %v1314_v22, 7 }
 0x1d2   : > { %v2746_v63 = vpack.c.bf16 %v1350_v31, %v1350_v31  ;;  %v2747_v34 = vpack.c.bf16 %v1358_v32, %v1358_v32  ;;  %v1348_v37 = vsel %vm433_vm2, 0.0, %v1332_v23  ;;  %v1356_v29 = vsel %vm433_vm2, %v1332_v23, 0.0 }
 0x1d3   : > { %1627 = vrot.lane.b32.xlu0 %v1597_v27, %s3027_s13  ;;  %v2742_v38 = vpack.c.bf16 %v1348_v37, %v1348_v37  ;;  %v2743_v36 = vpack.c.bf16 %v1356_v29, %v1356_v29  ;;  %v1351_v25 = vsel %vm433_vm2, 0.0, %v1335_v33  ;;  %v1359_v1 = vsel %vm433_vm2, %v1335_v33, 0.0 }
 0x1d4   : > { %1437 = vst.msk [vmem:[#allocation3 + $0x38] sm:$0xf] %vm374_vm0, %v2746_v63  ;;  %v2748_v42 = vpack.c.bf16 %v1351_v25, %v1351_v25  ;;  %v2749_v43 = vpack.c.bf16 %v1359_v1, %v1359_v1  ;;  %v1333_v46 = vrot.slane %v1312_v26, 7 }
 0x1d5   : > { %1438 = vst.msk [vmem:[#allocation3 + $0x3c] sm:$0x1] %vm376_vm1, %v2747_v34  ;;  %1434 = vst.msk [vmem:[#allocation3 + $0x2c] sm:$0x1] %vm376_vm1, %v2743_v36 }
 0x1d6   : > { %1433 = vst.msk [vmem:[#allocation3 + $0x28] sm:$0xf] %vm374_vm0, %v2742_v38  ;;  %1439 = vst.msk [vmem:[#allocation3 + $0x40] sm:$0xf] %vm374_vm0, %v2748_v42  ;;  %v1349_v50 = vsel %vm433_vm2, 0.0, %v1333_v46  ;;  %v1357_v7 = vsel %vm433_vm2, %v1333_v46, 0.0 }
 0x1d7   : > { %1440 = vst.msk [vmem:[#allocation3 + $0x44] sm:$0x1] %vm376_vm1, %v2749_v43  ;;  %v2744_v51 = vpack.c.bf16 %v1349_v50, %v1349_v50  ;;  %v2745_v44 = vpack.c.bf16 %v1357_v7, %v1357_v7 }
 0x1d9   : > { %1435 = vst.msk [vmem:[#allocation3 + $0x30] sm:$0xf] %vm374_vm0, %v2744_v51  ;;  %vm2176_vm0 = vcmask 523264  }
 0x1da   : > { %1436 = vst.msk [vmem:[#allocation3 + $0x34] sm:$0x1] %vm376_vm1, %v2745_v44  ;;  %vm2249_vm1 = vcmask 588800  }
 0x1db   : > { %v3526_v54 = vld [vmem:[#allocation3 + $0x38] sm:$0xf] }
 0x1dc   : > { %v3528_v55 = vld [vmem:[#allocation3 + $0x38] sm:$0xf]  ;;  %v2658_v59 = vcombine.low %v3526_v54, %v3526_v54  ;;  %v1465_v2 = vld [vmem:[#allocation3 + $0x3c] sm:$0x1]  ;;  %v1486_v16 = vld [vmem:[#allocation3 + $0x2c] sm:$0x1] }
 0x1dd   : > { %v2635_v24 = vcombine.low %v3528_v55, %v3528_v55  ;;  %v3534_v18 = vld [vmem:[#allocation3 + $0x28] sm:$0xf]  ;;  %v1473_v3 = vld [vmem:[#allocation3 + $0x38] sm:$0xe]  ;;  %v1488_v47 = vld [vmem:[#allocation3 + $0x3c] sm:$0x1] }
 0x1de   : > { %1901 = vrot.lane.b32.xlu1 %v2658_v59, %s3031_s23  ;;  %v2633_v40 = vcombine.low %v3534_v18, %v3534_v18  ;;  %v1496_v30 = vld [vmem:[#allocation3 + $0x38] sm:$0xe]  ;;  %v2628_v56 = vcombine.low %v1473_v3, %v1465_v2  ;;  %v3544_v57 = vld [vmem:[#allocation3 + $0x40] sm:$0xf]  ;;  %v1512_v13 = vld [vmem:[#allocation3 + $0x3c] sm:$0x1]  ;;  %v2643_v51 = vcombine.low %v3528_v55, %v1488_v47 }
 0x1df   : > { %1719 = vrot.lane.b32.xlu0 %v2635_v24, %s3034_s9  ;;  %v2651_v8 = vcombine.low %v1496_v30, %v1488_v47  ;;  %v1505_v11 = vld [vmem:[#allocation3 + $0x40] sm:$0xf]  ;;  %v1520_v15 = vld [vmem:[#allocation3 + $0x38] sm:$0xe]  ;;  %v1494_v19 = vld [vmem:[#allocation3 + $0x28] sm:$0xe]  ;;  %v2636_v22 = vcombine.low %v3544_v57, %v3544_v57  ;;  %v2666_v39 = vcombine.low %v3526_v54, %v1512_v13 }
 0x1e0   : > { %v1666_v9 = vrot.slane %v2628_v56, 1  ;;  %v2659_v23 = vcombine.low %v1505_v11, %v1505_v11  ;;  %v2674_v26 = vcombine.low %v1520_v15, %v1512_v13  ;;  %v2649_v27 = vcombine.low %v1494_v19, %v1486_v16  ;;  %v1463_v31 = vld [vmem:[#allocation3 + $0x2c] sm:$0x1]  ;;  %v1471_v32 = vld [vmem:[#allocation3 + $0x28] sm:$0xe]  ;;  %v3007_v30 = vld [vmem:[%s3778_s5] sm:$0xff]  }
 0x1e1   : > { %v1849_v10 = vrot.slane %v2651_v8, 1  ;;  %v2626_v34 = vcombine.low %v1471_v32, %v1463_v31  ;;  %v3552_v37 = vld [vmem:[#allocation3 + $0x30] sm:$0xf]  ;;  %v1513_v29 = vld [vmem:[#allocation3 + $0x44] sm:$0x1]  ;;  %v1792_v55 = vshll.u32 %v2643_v51, 16  ;;  %2852 = vmatprep.subr.bf16.mxu1 %v3007_v30  ;;  %2824 = vmatprep.subr.bf16.mxu0 %v3007_v30 }
 0x1e2   : > { %1809 = vrot.lane.b32.xlu1 %v1774_v14, %s3036_s11  ;;  %v2032_v33 = vrot.slane %v2674_v26, 1  ;;  %v1847_v63 = vrot.slane %v2649_v27, 1  ;;  %v1521_v38 = vld [vmem:[#allocation3 + $0x40] sm:$0xe]  ;;  %v3556_v36 = vld [vmem:[#allocation3 + $0x38] sm:$0xf]  ;;  %v2657_v25 = vcombine.low %v3552_v37, %v3552_v37  ;;  %v2641_v14 = vcombine.low %v3534_v18, %v1486_v16  ;;  %2857 = vmatpush3.bf16.msra.mxu1 %v3007_v30 }
 0x1e3   : > { %1715 = vrot.lane.b32.xlu0 %v2633_v40, %s3034_s9  ;;  %v1664_v1 = vrot.slane %v2626_v34, 1  ;;  %v2675_v17 = vcombine.low %v1521_v38, %v1513_v29  ;;  %v3560_v42 = vld [vmem:[#allocation3 + $0x30] sm:$0xf]  ;;  %v1464_v43 = vld [vmem:[#allocation3 + $0x34] sm:$0x1]  ;;  %v2620_v28 = vcombine.low %v3556_v36, %v1465_v2  ;;  %v2667_v18 = vcombine.low %v1505_v11, %v1513_v29  ;;  %2825 = vmatpush3.bf16.msra.mxu0 %v3007_v30  ;;  %v3008_v11 = vld [vmem:[%s3778_s5 + $0x8] sm:$0xff]  }
 0x1e4   : > { %v1472_v46 = vld [vmem:[#allocation3 + $0x30] sm:$0xe]  ;;  %v1489_v50 = vld [vmem:[#allocation3 + $0x44] sm:$0x1]  ;;  %v1497_v7 = vld [vmem:[#allocation3 + $0x40] sm:$0xe]  ;;  %v2634_v52 = vcombine.low %v3560_v42, %v3560_v42  ;;  %2853 = vmatprep.subr.bf16.mxu1 %v3008_v11  ;;  %2826 = vmatprep.subr.bf16.mxu0 %v3008_v11 }
 0x1e5   : > { %v2033_v44 = vrot.slane %v2675_v17, 1  ;;  %v2627_v53 = vcombine.low %v1472_v46, %v1464_v43  ;;  %v2652_v58 = vcombine.low %v1497_v7, %v1489_v50  ;;  %v3568_v59 = vld [vmem:[#allocation3 + $0x34] sm:$0x1]  ;;  %v1519_v24 = vld [vmem:[#allocation3 + $0x30] sm:$0xe]  ;;  %v1615_v40 = vshll.u32 %v2620_v28, 16 }
 0x1e6   : > { %1805 = vrot.lane.b32.xlu1 %v1760_v5, %s3036_s11  ;;  %v1487_v41 = vld [vmem:[#allocation3 + $0x34] sm:$0x1]  ;;  %v1495_v60 = vld [vmem:[#allocation3 + $0x30] sm:$0xe]  ;;  %v3574_v62 = vld [vmem:[#allocation3 + $0x28] sm:$0xf]  ;;  %v2673_v3 = vcombine.low %v1519_v24, %v3568_v59  ;;  %v2644_v16 = vcombine.low %v3544_v57, %v1489_v50  ;;  %2858 = vmatpush3.bf16.msra.mxu1 %v3008_v11  ;;  %v2665_v7 = vcombine.low %v3552_v37, %v3568_v59 }
 0x1e7   : > { %1623 = vrot.lane.b32.xlu0 %v1583_v35, %s3027_s13  ;;  %v1665_v0 = vrot.slane %v2627_v53, 1  ;;  %v1850_v2 = vrot.slane %v2652_v58, 1  ;;  %v2650_v47 = vcombine.low %v1495_v60, %v1487_v41  ;;  %v2618_v54 = vcombine.low %v3574_v62, %v1463_v31  ;;  %v3583_v5 = vld [vmem:[#allocation3 + $0x30] sm:$0xf]  ;;  %2827 = vmatpush3.bf16.msra.mxu0 %v3008_v11  ;;  %v3011_v37 = vld [vmem:[%s3778_s5 + $0x20] ss:$0 sps:$4 sm:$0xff]  }
 0x1e8   : > { %v1794_v4 = vrot.slane %v1792_v55, 1  ;;  %v1617_v48 = vrot.slane %v1615_v40, 1  ;;  %v2031_v35 = vrot.slane %v2673_v3, 1  ;;  %v1778_v8 = vshll.u32 %v2641_v14, 16  ;;  %v3009_v17 = vld [vmem:[%s3778_s5 + $0x10] sm:$0xff]  }
 0x1e9   : > { %v1848_v56 = vrot.slane %v2650_v47, 1  ;;  %v1613_v13 = vshrl.u32 %v2620_v28, 16  ;;  %v2619_v15 = vcombine.low %v3583_v5, %v1464_v43  ;;  %v1976_v27 = vshll.u32 %v2667_v18, 16  ;;  %2854 = vmatprep.subr.bf16.mxu1 %v3009_v17  ;;  %2828 = vmatprep.subr.bf16.mxu0 %v3009_v17  ;;  %v3605_v28 = vld [vmem:[#allocation3 + $0x1c] sm:$0x1] }
 0x1ea   : > { %1681 = vrot.lane.b32.xlu1 %v1666_v9, %s3029_s19  ;;  %v1969_v9 = vshll.u32 %v2666_v39, 16  ;;  %v1601_v31 = vshll.u32 %v2618_v54, 16  ;;  %v1776_v32 = vshrl.u32 %v2641_v14, 16  ;;  %v1799_v34 = vshll.u32 %v2644_v16, 16  ;;  %2859 = vmatpush3.bf16.msra.mxu1 %v3009_v17  ;;  %v3620_v3 = vld [vmem:[#allocation3 + $0x24] sm:$0x1] }
 0x1eb   : > { %1863 = vrot.lane.b32.xlu0 %v1849_v10, %s3035_s10  ;;  %v1790_v10 = vshrl.u32 %v2643_v51, 16  ;;  %v2642_v57 = vcombine.low %v3560_v42, %v1487_v41  ;;  %v1974_v43 = vshrl.u32 %v2667_v18, 16  ;;  %v1599_v46 = vshrl.u32 %v2618_v54, 16  ;;  %v3010_v42 = vld [vmem:[%s3778_s5 + $0x18] sm:$0xff]   ;;  %v3607_v51 = vld [vmem:[#allocation3 + $0x14] sm:$0x1]  ;;  %2829 = vmatpush3.bf16.msra.mxu0 %v3009_v17  ;;  %v3614_v41 = vpop.permute.xlu1 %1905 }
 0x1ec   : > { %v1971_v26 = vrot.slane %v1969_v9, 1  ;;  %2855 = vmatprep.subr.bf16.mxu1 %v3010_v42  ;;  %2830 = vmatprep.subr.bf16.mxu0 %v3010_v42  ;;  %v1606_v59 = vshrl.u32 %v2619_v15, 16  ;;  %v1797_v24 = vshrl.u32 %v2644_v16, 16  ;;  %v2662_v60 = vcombine.low %v3445_v61, %v3605_v28  ;;  %v1502_v47 = vld [vmem:[#allocation3 + $0x28] sm:$0xf] }
 0x1ed   : > { %v1795_v19 = vor.u32 %v1794_v4, %v1790_v10  ;;  %v1962_v14 = vshll.u32 %v2665_v7, 16  ;;  %v3622_v30 = vld [vmem:[#allocation3 + $0x2c] sm:$0x1]  ;;  %v2264_v54 = vsel %vm2262_vm10, %v3011_v37, 0  ;;  %v1783_v18 = vshrl.u32 %v2642_v57, 16  ;;  %v1620_v10 = vpop.permute.xlu0 %1619 }
 0x1ee   : > { %1721 = vrot.lane.b32.xlu1 %v2636_v22, %s3034_s9  ;;  %v1618_v22 = vor.u32 %v1617_v48, %v1613_v13  ;;  %2860 = vmatpush3.bf16.msra.mxu1 %v3010_v42  ;;  %v3629_v61 = vld [vmem:[%s3779_s6] sm:$0x3]  ;;  %v2664_v13 = vcombine.low %v1502_v47, %v3622_v30  ;;  %v1960_v11 = vshrl.u32 %v2665_v7, 16 }
 0x1ef   : > { %1903 = vrot.lane.b32.xlu0 %v2659_v23, %s3031_s23  ;;  %v1780_v23 = vrot.slane %v1778_v8, 1  ;;  %2831 = vmatpush3.bf16.msra.mxu0 %v3010_v42  ;;  %v3632_v9 = vpop.permute.xlu1 %2001 }
 0x1f0   : > { %2872 = vmatprep.subr.msk.bf16.mxu1 %vm2262_vm10, %v3011_v37  ;;  %2871 = vmatprep.subr.msk.bf16.mxu0 %vm2262_vm10, %v3011_v37  ;;  %v1953_v17 = vshrl.u32 %v2664_v13, 16 }
 0x1f1   : > { %v1781_v29 = vor.u32 %v1780_v23, %v1776_v32 }
 0x1f2   : > { %2045 = vrot.lane.b32.xlu1 %v2032_v33, %s3033_s28  ;;  %v1967_v33 = vshrl.u32 %v2666_v39, 16  ;;  %v2661_v39 = vcombine.low %v3461_v21, %v3607_v51  ;;  %v1941_v21 = vshll.u32 %v2662_v60, 16  ;;  %2861 = vmatpush3.bf16.msra.mxu1 %v2264_v54 }
 0x1f3   : > { %1859 = vrot.lane.b32.xlu0 %v1847_v63, %s3035_s10  ;;  %v1608_v63 = vshll.u32 %v2619_v15, 16  ;;  %2833 = vmatpush3.bf16.msra.mxu0 %v2264_v54  ;;  %v3641_v32 = vpop.permute.xlu1 %2049 }
 0x1f4   : > { %v1972_v38 = vor.u32 %v1971_v26, %v1967_v33  ;;  %v1934_v4 = vshll.u32 %v2661_v39, 16  ;;  %2873 = vmatprep.subr.msk.bf16.mxu1 %vm1238_vm3, %v3629_v61  ;;  %v1943_v15 = vrot.slane %v1941_v21, 1  ;;  %v1955_v26 = vshll.u32 %v2664_v13, 16  ;;  %v1668_v33 = vpop.permute.xlu0 %1667 }
 0x1f5   : > { %v1610_v50 = vrot.slane %v1608_v63, 1 }
 0x1f6   : > { %1677 = vrot.lane.b32.xlu1 %v1664_v1, %s3029_s19  ;;  %v1603_v1 = vrot.slane %v1601_v31, 1  ;;  %v1936_v16 = vrot.slane %v1934_v4, 1  ;;  %v1932_v31 = vshrl.u32 %v2661_v39, 16 }
 0x1f7   : > { %1899 = vrot.lane.b32.xlu0 %v2657_v25, %s3031_s23  ;;  %v1978_v25 = vrot.slane %v1976_v27, 1  ;;  %v1611_v40 = vor.u32 %v1610_v50, %v1606_v59  ;;  %v1939_v27 = vshrl.u32 %v2662_v60, 16 }
 0x1f8   : > { %v1604_v58 = vor.u32 %v1603_v1, %v1599_v46  ;;  %v1937_v63 = vor.u32 %v1936_v16, %v1932_v31 }
 0x1f9   : > { %v1979_v53 = vor.u32 %v1978_v25, %v1974_v43  ;;  %v1516_v25 = vld [vmem:[#allocation3 + $0x18] sm:$0xe]  ;;  %v2054_v43 = vsel %vm2051_vm11, %v3412_v6, %v1620_v10 }
 0x1fa   : > { %1717 = vrot.lane.b32.xlu1 %v2634_v52, %s3034_s9  ;;  %v1785_v52 = vshll.u32 %v2642_v57, 16  ;;  %v2077_v37 = vsel %vm1127_vm6, %v2054_v43, %v1668_v33 }
 0x1fb   : > { %2047 = vrot.lane.b32.xlu0 %v2033_v44, %s3033_s28  ;;  %v1801_v44 = vrot.slane %v1799_v34, 1  ;;  %v1944_v34 = vor.u32 %v1943_v15, %v1939_v27 }
 0x1fc   : > { %v1787_v55 = vrot.slane %v1785_v52, 1  ;;  %v2670_v52 = vcombine.low %v1516_v25, %v3605_v28 }
 0x1fe   : > { %1865 = vrot.lane.b32.xlu1 %v1850_v2, %s3035_s10  ;;  %v1501_v2 = vld [vmem:[#allocation3 + $0x20] sm:$0xf]  ;;  %v1788_v8 = vor.u32 %v1787_v55, %v1783_v18  ;;  %v2028_v60 = vrot.slane %v2670_v52, 1 }
 0x1ff   : > { %1679 = vrot.lane.b32.xlu0 %v1665_v0, %s3029_s19  ;;  %v1802_v0 = vor.u32 %v1801_v44, %v1797_v24  ;;  %v2655_v48 = vcombine.low %v1501_v2, %v1501_v2 }
 0x202   : > { %1861 = vrot.lane.b32.xlu1 %v1848_v56, %s3035_s10  ;;  %v2663_v56 = vcombine.low %v1501_v2, %v3620_v3 }
 0x203   : > { %2043 = vrot.lane.b32.xlu0 %v2031_v35, %s3033_s28  ;;  %v1964_v35 = vrot.slane %v1962_v14, 1 }
 0x204   : > { %v1948_v23 = vshll.u32 %v2663_v56, 16  ;;  %v1946_v1 = vshrl.u32 %v2663_v56, 16 }
 0x206   : > { %1633 = vrot.lane.b32.xlu1 %v1618_v22, %s3027_s13  ;;  %v2656_v22 = vcombine.low %v1502_v47, %v1502_v47  ;;  %v1950_v57 = vrot.slane %v1948_v23, 1 }
 0x207   : > { %1815 = vrot.lane.b32.xlu0 %v1795_v19, %s3036_s11  ;;  %v1965_v19 = vor.u32 %v1964_v35, %v1960_v11 }
 0x208   : > { %v1951_v7 = vor.u32 %v1950_v57, %v1946_v1 }
 0x20a   : > { %1997 = vrot.lane.b32.xlu1 %v1972_v38, %s3032_s27  ;;  %v1515_v38 = vld [vmem:[#allocation3 + $0x10] sm:$0xe] }
 0x20b   : > { %1811 = vrot.lane.b32.xlu0 %v1781_v29, %s3036_s11  ;;  %v1957_v29 = vrot.slane %v1955_v26, 1  ;;  %v2669_v44 = vcombine.low %v1515_v38, %v3607_v51 }
 0x20d   : > { %v1958_v42 = vor.u32 %v1957_v29, %v1953_v17  ;;  %v2027_v24 = vrot.slane %v2669_v44, 1 }
 0x20e   : > { %1629 = vrot.lane.b32.xlu1 %v1604_v58, %s3027_s13  ;;  %v1518_v58 = vld [vmem:[#allocation3 + $0x28] sm:$0xe] }
 0x20f   : > { %1999 = vrot.lane.b32.xlu0 %v1979_v53, %s3032_s27  ;;  %v1517_v53 = vld [vmem:[#allocation3 + $0x20] sm:$0xe]  ;;  %v2672_v14 = vcombine.low %v1518_v58, %v3622_v30 }
 0x210   : > { %v2671_v39 = vcombine.low %v1517_v53, %v3620_v3 }
 0x212   : > { %1817 = vrot.lane.b32.xlu1 %v1802_v0, %s3036_s11  ;;  %v2030_v0 = vrot.slane %v2672_v14, 1 }
 0x213   : > { %1631 = vrot.lane.b32.xlu0 %v1611_v40, %s3027_s13  ;;  %v2029_v40 = vrot.slane %v2671_v39, 1 }
 0x216   : > { %1813 = vrot.lane.b32.xlu1 %v1788_v8, %s3036_s11 }
 0x217   : > { %1895 = vrot.lane.b32.xlu0 %v2655_v48, %s3031_s23 }
 0x21a   : > { %1897 = vrot.lane.b32.xlu1 %v2656_v22, %s3031_s23 }
 0x21b   : > { %1995 = vrot.lane.b32.xlu0 %v1965_v19, %s3032_s27 }
 0x21e   : > { %1989 = vrot.lane.b32.xlu1 %v1944_v34, %s3032_s27 }
 0x21f   : > { %1987 = vrot.lane.b32.xlu0 %v1937_v63, %s3032_s27 }
 0x220   : > { %v3647_v46 = vpop.permute.xlu1 %1893 }
 0x221   : > { %v3649_v50 = vpop.permute.xlu0 %1711 }
 0x222   : > { %1993 = vrot.lane.b32.xlu1 %v1958_v42, %s3032_s27 }
 0x223   : > { %1991 = vrot.lane.b32.xlu0 %v1951_v7, %s3032_s27  ;;  %s278_s27 = scalar_lea.vmem %s3780_s7, %s2700_s26 }
 0x224   : > { %v1674_v59 = vpop.permute.xlu1 %1673 }
 0x225   : > { %v1708_v6 = vpop.permute.xlu0 %1707 }
 0x226   : > { %v2093_v51 = vsel %vm1144_vm7, %v2077_v37, %v1708_v6  ;;  %2037 = vrot.lane.b32.xlu1 %v2028_v60, %s3033_s28 }
 0x227   : > { %2035 = vrot.lane.b32.xlu0 %v2027_v24, %s3033_s28 }
 0x228   : > { %v1714_v28 = vpop.permute.xlu1 %1713 }
 0x229   : > { %v1856_v55 = vpop.permute.xlu0 %1855 }
 0x22a   : > { %2041 = vrot.lane.b32.xlu1 %v2030_v0, %s3033_s28 }
 0x22b   : > { %2039 = vrot.lane.b32.xlu0 %v2029_v40, %s3033_s28 }
 0x22c   : > { %v1670_v2 = vpop.permute.xlu1 %1669 }
 0x22d   : > { %v1852_v47 = vpop.permute.xlu0 %1851 }
 0x230   : > { %v1710_v54 = vpop.permute.xlu1 %1709 }
 0x231   : > { %v1892_v3 = vpop.permute.xlu0 %1891 }
 0x234   : > { %v1858_v18 = vpop.permute.xlu1 %1857 }
 0x235   : > { %v1676_v30 = vpop.permute.xlu0 %1675 }
 0x238   : > { %v1854_v21 = vpop.permute.xlu1 %1853 }
 0x239   : > { %v1672_v4 = vpop.permute.xlu0 %1671 }
 0x23c   : > { %v1626_v48 = vpop.permute.xlu1 %1625 }
 0x23d   : > { %v1808_v35 = vpop.permute.xlu0 %1807  ;;  %v2063_v56 = vsel %vm2051_vm11, %v3459_v20, %v1626_v48 }
 0x23e   : > { %v2083_v8 = vsel %vm1127_vm6, %v2063_v56, %v1674_v59 }
 0x23f   : > { %v2099_v10 = vsel %vm1144_vm7, %v2083_v8, %v1714_v28 }
 0x240   : > { %v1622_v13 = vpop.permute.xlu1 %1621 }
 0x241   : > { %v1804_v11 = vpop.permute.xlu0 %1803  ;;  %v2057_v15 = vsel %vm2051_vm11, %v3470_v12, %v1622_v13 }
 0x242   : > { %v2110_v16 = vsel %vm2108_vm12, %v2093_v51, %v1804_v11  ;;  %v2079_v19 = vsel %vm1127_vm6, %v2057_v15, %v1670_v2 }
 0x243   : > { %v2127_v22 = vsel %vm2125_vm13, %v2110_v16, %v1852_v47  ;;  %v2095_v20 = vsel %vm1144_vm7, %v2079_v19, %v1710_v54 }
 0x244   : > { %v3674_v23 = vsel %vm2142_vm14, %v2127_v22, %v1892_v3 }
 0x245   : > { %v1628_v26 = vpop.permute.xlu0 %1627 }
 0x246   : > { %v2066_v3 = vsel %vm2051_vm11, %v3485_v45, %v1628_v26 }
 0x250   : > { %v3676_v27 = vpop.permute.xlu1 %1901 }
 0x251   : > { %v1720_v31 = vpop.permute.xlu0 %1719 }
 0x254   : > { %v1810_v33 = vpop.permute.xlu1 %1809 }
 0x255   : > { %v1716_v63 = vpop.permute.xlu0 %1715  ;;  %v2116_v34 = vsel %vm2108_vm12, %v2099_v10, %v1810_v33 }
 0x256   : > { %v3680_v12 = vsel %vm2125_vm13, %v2116_v34, %v1858_v18 }
 0x258   : > { %v1806_v57 = vpop.permute.xlu1 %1805 }
 0x259   : > { %v1624_v29 = vpop.permute.xlu0 %1623  ;;  %v2112_v38 = vsel %vm2108_vm12, %v2095_v20, %v1806_v57 }
 0x25a   : > { %v2060_v25 = vsel %vm2051_vm11, %v3512_v49, %v1624_v29  ;;  %v2129_v1 = vsel %vm2125_vm13, %v2112_v38, %v1854_v21 }
 0x25b   : > { %v2081_v17 = vsel %vm1127_vm6, %v2060_v25, %v1672_v4  ;;  %v3691_v7 = vsel %vm2142_vm14, %v2129_v1, %v3647_v46  ;;  %v2085_v4 = vsel %vm1127_vm6, %v2066_v3, %v1676_v30 }
 0x25c   : > { %v2097_v43 = vsel %vm1144_vm7, %v2081_v17, %v3649_v50  ;;  %v1682_v42 = vpop.permute.xlu1 %1681  ;;  %v2101_v8 = vsel %vm1144_vm7, %v2085_v4, %v1716_v63 }
 0x25d   : > { %v1864_v44 = vpop.permute.xlu0 %1863  ;;  %v2114_v52 = vsel %vm2108_vm12, %v2097_v43, %v1808_v35 }
 0x25e   : > { %v3695_v53 = vsel %vm2125_vm13, %v2114_v52, %v1856_v55  ;;  %v3012_v52 = vld [vmem:[%s3104_s8] ss:$8 sps:$4 sm:$0xff]  }
 0x260   : > { %v1722_v58 = vpop.permute.xlu1 %1721 }
 0x261   : > { %v1904_v49 = vpop.permute.xlu0 %1903 }
 0x264   : > { %v2046_v37 = vpop.permute.xlu1 %2045 }
 0x265   : > { %v1860_v59 = vpop.permute.xlu0 %1859 }
 0x268   : > { %v1678_v6 = vpop.permute.xlu1 %1677 }
 0x269   : > { %v1900_v24 = vpop.permute.xlu0 %1899 }
 0x26c   : > { %v1718_v60 = vpop.permute.xlu1 %1717 }
 0x26d   : > { %v2048_v39 = vpop.permute.xlu0 %2047 }
 0x270   : > { %v1866_v50 = vpop.permute.xlu1 %1865 }
 0x271   : > { %v1680_v14 = vpop.permute.xlu0 %1679 }
 0x274   : > { %v1862_v51 = vpop.permute.xlu1 %1861 }
 0x275   : > { %v2044_v46 = vpop.permute.xlu0 %2043 }
 0x278   : > { %v1634_v28 = vpop.permute.xlu1 %1633 }
 0x279   : > { %v1816_v40 = vpop.permute.xlu0 %1815  ;;  %v2075_v55 = vsel %vm2051_vm11, %v3556_v36, %v1634_v28 }
 0x27a   : > { %v2091_v18 = vsel %vm1127_vm6, %v2075_v55, %v1682_v42 }
 0x27b   : > { %v2107_v48 = vsel %vm1144_vm7, %v2091_v18, %v1722_v58 }
 0x27c   : > { %v1998_v0 = vpop.permute.xlu1 %1997 }
 0x27d   : > { %v1812_v2 = vpop.permute.xlu0 %1811 }
 0x27e   : > { %v2118_v13 = vsel %vm2108_vm12, %v2101_v8, %v1812_v2 }
 0x27f   : > { %v2135_v20 = vsel %vm2125_vm13, %v2118_v13, %v1860_v59 }
 0x280   : > { %v1630_v47 = vpop.permute.xlu1 %1629 }
 0x281   : > { %v2000_v54 = vpop.permute.xlu0 %1999  ;;  %v2069_v21 = vsel %vm2051_vm11, %v3574_v62, %v1630_v47 }
 0x282   : > { %v2087_v36 = vsel %vm1127_vm6, %v2069_v21, %v1678_v6  ;;  %v2364_v6 = vsel %vm1238_vm3, %v3629_v61, 0 }
 0x283   : > { %v2103_v16 = vsel %vm1144_vm7, %v2087_v36, %v1718_v60  ;;  %v3013_v60 = vld [vmem:[%s3104_s8 + $0x10] ss:$8 sps:$4 sm:$0xff]  }
 0x284   : > { %v1818_v35 = vpop.permute.xlu1 %1817 }
 0x285   : > { %v1632_v56 = vpop.permute.xlu0 %1631  ;;  %v2124_v10 = vsel %vm2108_vm12, %v2107_v48, %v1818_v35 }
 0x286   : > { %v2072_v45 = vsel %vm2051_vm11, %v3583_v5, %v1632_v56  ;;  %v2141_v11 = vsel %vm2125_vm13, %v2124_v10, %v1866_v50 }
 0x287   : > { %v2089_v62 = vsel %vm1127_vm6, %v2072_v45, %v1680_v14  ;;  %v2158_v5 = vsel %vm2142_vm14, %v2141_v11, %v3614_v41  ;;  %v2152_v41 = vsel %vm2142_vm14, %v2135_v20, %v1900_v24 }
 0x288   : > { %v2105_v30 = vsel %vm1144_vm7, %v2089_v62, %v1720_v31  ;;  %v1814_v19 = vpop.permute.xlu1 %1813  ;;  %v2175_v29 = vsel %vm2159_vm15, %v2158_v5, %v3632_v9 }
 0x289   : > { %v2122_v15 = vsel %vm2108_vm12, %v2105_v30, %v1816_v40  ;;  %v1896_v22 = vpop.permute.xlu0 %1895  ;;  %v2120_v33 = vsel %vm2108_vm12, %v2103_v16, %v1814_v19  ;;  %v2192_v9 = vsel %vm2176_vm0, %v2175_v29, %v3641_v32 }
 0x28a   : > { %v2139_v26 = vsel %vm2125_vm13, %v2122_v15, %v1864_v44  ;;  %v2137_v63 = vsel %vm2125_vm13, %v2120_v33, %v1862_v51  ;;  %v2148_v40 = vsel %vm2142_vm14, %v3695_v53, %v1896_v22  ;;  %v3015_v53 = vld [vmem:[%s3104_s8 + $0x30] ss:$8 sps:$4 sm:$0xff]  }
 0x28b   : > { %v2156_v31 = vsel %vm2142_vm14, %v2139_v26, %v1904_v49  ;;  %v2154_v34 = vsel %vm2142_vm14, %v2137_v63, %v3676_v27 }
 0x28c   : > { %v2173_v57 = vsel %vm2159_vm15, %v2156_v31, %v2000_v54  ;;  %v1898_v38 = vpop.permute.xlu1 %1897  ;;  %v2171_v1 = vsel %vm2159_vm15, %v2154_v34, %v1998_v0 }
 0x28d   : > { %v1996_v25 = vpop.permute.xlu0 %1995  ;;  %v2188_v43 = vsel %vm2176_vm0, %v2171_v1, %v2046_v37  ;;  %v2190_v42 = vsel %vm2176_vm0, %v2173_v57, %v2048_v39  ;;  %v3014_v39 = vld [vmem:[%s3104_s8 + $0x20] ss:$8 sps:$4 sm:$0xff]   ;;  %v2150_v0 = vsel %vm2142_vm14, %v3680_v12, %v1898_v38 }
 0x28e   : > { %v2169_v17 = vsel %vm2159_vm15, %v2152_v41, %v1996_v25  ;;  %v2680_v59 = vcombine.low %v2190_v42, %v2192_v9 }
 0x28f   : > { %v2186_v27 = vsel %vm2176_vm0, %v2169_v17, %v2044_v46 }
 0x290   : > { %v2679_v44 = vcombine.low %v2186_v27, %v2188_v43  ;;  %v1990_v58 = vpop.permute.xlu1 %1989 }
 0x291   : > { %v1988_v49 = vpop.permute.xlu0 %1987  ;;  %v2163_v32 = vsel %vm2159_vm15, %v3691_v7, %v1990_v58 }
 0x292   : > { %2838 = vmatprep.mubr.msk.bf16.mxu1 %vm2249_vm1, %v2679_v44  ;;  %v2161_v50 = vsel %vm2159_vm15, %v3674_v23, %v1988_v49 }
 0x293   : > { %2839 = vmatmul.mubr.msk.bf16.vlgmr.msra.gmra.mrb[0].mxu1 %vm2249_vm1, %v2680_v59 }
 0x294   : > { %2843 = vmatpush3.bf16.msra.mxu1 %v2364_v6  ;;  %2844 = vmatprep.mubr.msk.bf16.mxu1 %vm1085_vm4, %v3012_v52  ;;  %v1994_v37 = vpop.permute.xlu1 %1993 }
 0x295   : > { %v1992_v24 = vpop.permute.xlu0 %1991  ;;  %v2167_v23 = vsel %vm2159_vm15, %v2150_v0, %v1994_v37 }
 0x296   : > { %v2165_v7 = vsel %vm2159_vm15, %v2148_v40, %v1992_v24 }
 0x298   : > { %v2038_v14 = vpop.permute.xlu1 %2037 }
 0x299   : > { %v2036_v51 = vpop.permute.xlu0 %2035  ;;  %v2180_v61 = vsel %vm2176_vm0, %v2163_v32, %v2038_v14 }
 0x29a   : > { %v2178_v46 = vsel %vm2176_vm0, %v2161_v50, %v2036_v51 }
 0x29b   : > { %v2677_v28 = vcombine.low %v2178_v46, %v2180_v61  ;;  %2845 = vmatmul.mubr.msk.bf16.vlgmr.msra.gmra.mrb[4].mxu1 %vm1085_vm4, %v3013_v60 }
 0x29c   : > { %2848 = vmatprep.mubr.msk.bf16.mxu1 %vm1085_vm4, %v3014_v39  ;;  %v2042_v2 = vpop.permute.xlu1 %2041 }
 0x29d   : > { %2834 = vmatprep.mubr.msk.bf16.mxu0 %vm2249_vm1, %v2677_v28  ;;  %v2040_v55 = vpop.permute.xlu0 %2039  ;;  %v2184_v47 = vsel %vm2176_vm0, %v2167_v23, %v2042_v2 }
 0x29e   : > { %v2182_v54 = vsel %vm2176_vm0, %v2165_v7, %v2040_v55 }
 0x29f   : > { %v2678_v3 = vcombine.low %v2182_v54, %v2184_v47 }
 0x2a1   : > { %2835 = vmatmul.mubr.msk.bf16.vlgmr.msra.gmra.mrb[8].mxu0 %vm2249_vm1, %v2678_v3 }
 0x2a3   : > { %2849 = vmatmul.mubr.msk.bf16.gmra.mrb[0].mxu1 %vm1085_vm4, %v3015_v53 }
 0x36e   : > { %v2846_v12 = vpop.f32.mrb[4].mxu1 }
 0x36f   : > { %v2400_v18 = vpop.f32.mrb[5].mxu1 }
 0x370   : > { %v2847_v21 = vpop.f32.mrb[6].mxu1 }
 0x371   : > { %v2403_v4 = vpop.f32.mrb[7].mxu1 }
 0x374   : > { %v2836_v48 = vpop.f32.mrb[8].mxu0 }
 0x375   : > { %v2409_v35 = vadd.f32 %v2846_v12, %v2836_v48  ;;  %v2300_v56 = vpop.f32.mrb[9].mxu0 }
 0x376   : > { %v2401_v8 = vadd.f32 %v2400_v18, %v2300_v56  ;;  %v2837_v36 = vpop.f32.mrb[10].mxu0  ;;  %v2850_v10 = vpop.f32.mrb[0].mxu1 }
 0x377   : > { %2433 = vst [vmem:[%s278_s27 + $0x10] sm:$0xff] %v2409_v35  ;;  %v2412_v45 = vadd.f32 %v2847_v21, %v2837_v36  ;;  %2437 = vst [vmem:[%s278_s27 + $0x30] sm:$0xff] %v2850_v10  ;;  %v2303_v13 = vpop.f32.mrb[11].mxu0  ;;  %v2416_v11 = vpop.f32.mrb[1].mxu1 }
 0x378   : > { %2431 = vst [vmem:[%s278_s27] sm:$0xff] %v2401_v8  ;;  %v2404_v62 = vadd.f32 %v2403_v4, %v2303_v13  ;;  %2435 = vst [vmem:[%s278_s27 + $0x20] sm:$0xff] %v2416_v11  ;;  %v2851_v30 = vpop.f32.mrb[2].mxu1 }
 0x379   : > { %2434 = vst [vmem:[%s278_s27 + $0x18] sm:$0xff] %v2412_v45  ;;  %2438 = vst [vmem:[%s278_s27 + $0x38] sm:$0xff] %v2851_v30  ;;  %v2419_v15 = vpop.f32.mrb[3].mxu1 }
 0x37a   : > { %2432 = vst [vmem:[%s278_s27 + $0x8] sm:$0xff] %v2404_v62  ;;  %2436 = vst [vmem:[%s278_s27 + $0x28] sm:$0xff] %v2419_v15 }
 0x37b PF: > { %s17_s24 = sadd.s32 1, %s3022_s24  }
 0x37c   : > { %p14_p4 = scmp.ge.s32.totalorder %s17_s24, 4  }
 0x37e   :  { %16 = sbr.rel (!%p14_p4) target bundleno = 1 (0x1), region = 85 }

</bundles_post_ra>
